<compile_context>
chip_gen: v6e
topology: v6e:2x2x1
jax: 0.10.0
libtpu: 0.0.40
codegen_flags: <defaults>
</compile_context>

<pallas_src>
import math

import jax
import jax.numpy as jnp
from jax import lax
from jax.experimental import pallas as pl
from jax.experimental.pallas import tpu as pltpu


def _round_up(x, m):
    return ((x + m - 1) // m) * m


def wide_conv_kernel(s1_ref, s2_ref, s1q_ref, s2q_ref, w_ref, cw_ref, cb_ref,
                     o1_ref, o2_ref):
    """One batch element per grid step.

    s1_ref, s2_ref   : (1, L, Dp)  raw sentences (conv channel 0), lane-padded with 0
    s1q_ref, s2q_ref : (1, L, Dp)  masked + augmented sentences (distance dot only)
    w_ref            : (L, Dp)     attention projection W (lane-padded with 0)
    cw_ref           : (18,) SMEM  conv weight, flattened (in_ch=2, kh=3, kw=3)
    cb_ref           : (1,)  SMEM  conv bias
    o1_ref, o2_ref   : (1, L, Dp)  tanh(conv(...)) outputs (lane-padded)
    """
    f32 = jnp.float32
    hi = lax.Precision.HIGHEST      # explicit per-dot precision (review item)

    s1 = s1_ref[0]                  # (L, Dp)
    s2 = s2_ref[0]
    s1q = s1q_ref[0]
    s2q = s2q_ref[0]
    L, Dp = s1.shape

    # ---- match_score: one MXU dot thanks to the augmentation lanes ----------
    #   (s1q @ s2q^T)[i,j] = s1_i.s2_j - 0.5*(|s1_i|^2 + |s2_j|^2) = -0.5*d2[i,j]
    nt = (((1,), (1,)), ((), ()))                     # contract last dims (N-T)
    half = lax.dot_general(s1q, s2q, nt, preferred_element_type=f32,
                           precision=hi)              # (L, L)
    d2 = jnp.maximum(-2.0 * half, 0.0)
    A = 1.0 / (1.0 + jnp.sqrt(d2))                    # (L, L)

    # ---- attention feature maps ---------------------------------------------
    W = w_ref[...]                                    # (L, Dp)
    attn1 = lax.dot_general(A, W, (((1,), (0,)), ((), ())),
                            preferred_element_type=f32, precision=hi)
    # attn2 = A.T @ W via a transposed contraction (contract A dim 0 with W dim 0);
    # no explicit transpose, no recomputation of A.T from distances.
    attn2 = lax.dot_general(A, W, (((0,), (0,)), ((), ())),
                            preferred_element_type=f32, precision=hi)

    # ---- 2-channel 3x3 conv (zero padding) + tanh, via XLU rolls -------------
    w = [cw_ref[i] for i in range(18)]                # 18 SMEM scalars, read once
    bias = cb_ref[0]
    row = lax.broadcasted_iota(jnp.int32, (L, Dp), 0)
    not_top = (row > 0).astype(f32)                   # zero row wrapped by roll(+1, axis=0)
    not_bot = (row < L - 1).astype(f32)               # zero row wrapped by roll(L-1, axis=0)

    def conv_tanh(ch0, ch1):
        # Column (lane) shifts. The wrapper guarantees >= 2 all-zero pad lanes in
        # every conv input, so the circularly wrapped lane is exactly the conv's
        # zero padding; wrapped garbage only lands in discarded pad columns.
        sh = []
        for ch in (ch0, ch1):
            sh.append((pltpu.roll(ch, 1, axis=1),        # x[:, j-1]
                       ch,                               # x[:, j]
                       pltpu.roll(ch, Dp - 1, axis=1)))  # x[:, j+1]

        def mix(di):     # sum_{c,dj} w[c,di,dj] * column-shifted channel
            acc = w[di * 3] * sh[0][0]
            for c in range(2):
                for dj in range(3):
                    if c == 0 and dj == 0:
                        continue
                    acc = acc + w[c * 9 + di * 3 + dj] * sh[c][dj]
            return acc

        t0, t1, t2 = mix(0), mix(1), mix(2)
        # Row (sublane) shifts; mask the circularly wrapped row to reproduce the
        # conv's zero padding at the top/bottom boundary.
        out = (pltpu.roll(t0, 1, axis=0) * not_top       # row i-1 contribution
               + t1                                      # row i   contribution
               + pltpu.roll(t2, L - 1, axis=0) * not_bot # row i+1 contribution
               + bias)
        return jnp.tanh(out)

    o1_ref[0] = conv_tanh(s1, attn1).astype(o1_ref.dtype)
    o2_ref[0] = conv_tanh(s2, attn2).astype(o2_ref.dtype)


def wide_conv(sent1, sent2, mask1, mask2, params):
    """sent1/sent2: (B, L, D); mask1/mask2: (B, L). Returns (o1, o2), each (B, L, D)."""
    B, L, D = sent1.shape
    f32 = jnp.float32
    # >= 2 spare lanes: 2 augmentation columns for the distance dot and a
    # guaranteed all-zero column so the circular lane rolls act as zero padding.
    Dp = _round_up(D + 2, 128)
    pad = Dp - D

    sent1 = sent1.astype(f32)
    sent2 = sent2.astype(f32)
    keep1 = (mask1 == 0).astype(f32)[..., None]
    keep2 = (mask2 == 0).astype(f32)[..., None]
    s1m = sent1 * keep1                               # masked copies (match_score only)
    s2m = sent2 * keep2
    sq1 = jnp.sum(s1m * s1m, axis=-1, keepdims=True)  # (B, L, 1)
    sq2 = jnp.sum(s2m * s2m, axis=-1, keepdims=True)

    one = jnp.ones((B, L, 1), f32)
    tail = jnp.zeros((B, L, pad - 2), f32)
    # Augmented slabs so the kernel's single dot yields -0.5 * pairwise d2.
    s1q = jnp.concatenate([s1m, one, -0.5 * sq1, tail], axis=-1)      # (B, L, Dp)
    s2q = jnp.concatenate([s2m, -0.5 * sq2, one, tail], axis=-1)      # (B, L, Dp)

    s1p = jnp.pad(sent1, ((0, 0), (0, 0), (0, pad)))                  # raw (conv ch 0)
    s2p = jnp.pad(sent2, ((0, 0), (0, 0), (0, pad)))
    Wp = jnp.pad(params["W"].astype(f32), ((0, 0), (0, pad)))
    cw = params["conv_w"].astype(f32).reshape(-1)     # (18,) = (in_ch=2, 3, 3)
    cb = params["conv_b"].astype(f32).reshape(-1)     # (1,)

    sent_spec = pl.BlockSpec((1, L, Dp), lambda b: (b, 0, 0))
    w_spec = pl.BlockSpec((L, Dp), lambda b: (0, 0))
    smem_spec = pl.BlockSpec(memory_space=pltpu.MemorySpace.SMEM)

    o1p, o2p = pl.pallas_call(
        wide_conv_kernel,
        out_shape=[jax.ShapeDtypeStruct((B, L, Dp), f32),
                   jax.ShapeDtypeStruct((B, L, Dp), f32)],
        grid_spec=pltpu.PrefetchScalarGridSpec(
            num_scalar_prefetch=0,
            grid=(B,),
            in_specs=[sent_spec, sent_spec, sent_spec, sent_spec,
                      w_spec, smem_spec, smem_spec],
            out_specs=[sent_spec, sent_spec],
        ),
        compiler_params=pltpu.CompilerParams(
            dimension_semantics=("parallel",)),
    )(s1p, s2p, s1q, s2q, Wp, cw, cb)

    return o1p[:, :, :D], o2p[:, :, :D]


def wide_conv_ref(sent1, sent2, mask1, mask2, params):
    """Pure-JAX reference mirroring the PyTorch module."""
    f32 = jnp.float32
    keep1 = (mask1 == 0).astype(f32)[..., None]
    keep2 = (mask2 == 0).astype(f32)[..., None]
    s1 = sent1 * keep1
    s2 = sent2 * keep2
    diff = s1[:, :, None, :] - s2[:, None, :, :]
    A = 1.0 / (1.0 + jnp.sqrt(jnp.sum(diff * diff, axis=-1)))          # (B, L, L)
    W = params["W"]
    attn1 = jnp.einsum("bij,jd->bid", A, W)
    attn2 = jnp.einsum("bij,id->bjd", A, W)                            # A.T @ W

    def conv_tanh(ch0, ch1):
        x = jnp.stack([ch0, ch1], axis=1)                              # (B, 2, L, D)
        y = lax.conv_general_dilated(
            x, params["conv_w"], window_strides=(1, 1),
            padding=((1, 1), (1, 1)),
            dimension_numbers=("NCHW", "OIHW", "NCHW"))
        return jnp.tanh(y[:, 0] + params["conv_b"][0])

    return conv_tanh(sent1, attn1), conv_tanh(sent2, attn2)


if __name__ == "__main__":
    # The kernel sets precision explicitly per dot; this flag only keeps the
    # pure-JAX reference (einsum / conv) at full f32 accuracy for a tight check.
    jax.config.update("jax_default_matmul_precision", "highest")

    batch, seq_len, embeds_size = 2, 16, 32

    key = jax.random.PRNGKey(0)
    k1, k2, k3, k4, k5, k6, k7 = jax.random.split(key, 7)
    sent1 = jax.random.normal(k1, (batch, seq_len, embeds_size), dtype=jnp.float32)
    sent2 = jax.random.normal(k2, (batch, seq_len, embeds_size), dtype=jnp.float32)
    mask1 = (jax.random.uniform(k3, (batch, seq_len)) > 0.75).astype(jnp.float32)
    mask2 = (jax.random.uniform(k4, (batch, seq_len)) > 0.75).astype(jnp.float32)

    params = dict(
        # xavier_normal_ on (seq_len, embeds_size)
        W=jax.random.normal(k5, (seq_len, embeds_size), dtype=jnp.float32)
          * math.sqrt(2.0 / (seq_len + embeds_size)),
        conv_w=0.2 * jax.random.normal(k6, (1, 2, 3, 3), dtype=jnp.float32),
        conv_b=0.05 * jax.random.normal(k7, (1,), dtype=jnp.float32),
    )

    o1, o2 = wide_conv(sent1, sent2, mask1, mask2, params)
    o1, o2 = jax.block_until_ready((o1, o2))

    r1, r2 = wide_conv_ref(sent1, sent2, mask1, mask2, params)
    assert o1.shape == (batch, seq_len, embeds_size)
    assert o2.shape == (batch, seq_len, embeds_size)
    assert jnp.allclose(o1, r1, atol=1e-3, rtol=1e-3), "o1 mismatch vs reference"
    assert jnp.allclose(o2, r2, atol=1e-3, rtol=1e-3), "o2 mismatch vs reference"

    print("KERNEL_OK")
</pallas_src>

<mosaic_0001>
module attributes {stable_mosaic.version = 11 : i64} {
  func.func @wide_conv_kernel(%arg0: i32, %arg1: memref<1x16x128xf32, #tpu.memory_space<vmem>>, %arg2: memref<1x16x128xf32, #tpu.memory_space<vmem>>, %arg3: memref<1x16x128xf32, #tpu.memory_space<vmem>>, %arg4: memref<1x16x128xf32, #tpu.memory_space<vmem>>, %arg5: memref<16x128xf32, #tpu.memory_space<vmem>>, %arg6: memref<18xf32, #tpu.memory_space<smem>>, %arg7: memref<1xf32, #tpu.memory_space<smem>>, %arg8: memref<1x16x128xf32, #tpu.memory_space<vmem>>, %arg9: memref<1x16x128xf32, #tpu.memory_space<vmem>>) attributes {dimension_semantics = [#tpu.dimension_semantics<parallel>], iteration_bounds = array<i64: 2>, scalar_prefetch = 0 : i64, scratch_operands = 0 : i64, tpu.core_type = #tpu.core_type<tc>, window_params = [{transform_indices = @transform_0, window_bounds = array<i64: 1, 16, 128>}, {transform_indices = @transform_1, window_bounds = array<i64: 1, 16, 128>}, {transform_indices = @transform_2, window_bounds = array<i64: 1, 16, 128>}, {transform_indices = @transform_3, window_bounds = array<i64: 1, 16, 128>}, {pipeline_mode = #tpu.pipeline_mode<synchronous>, transform_indices = @transform_4, window_bounds = array<i64: 16, 128>}, {transform_indices = @transform_5, window_bounds = array<i64: 18>}, {transform_indices = @transform_6, window_bounds = array<i64: 1>}, {transform_indices = @transform_7, window_bounds = array<i64: 1, 16, 128>}, {transform_indices = @transform_8, window_bounds = array<i64: 1, 16, 128>}]} {
    %c0 = arith.constant 0 : index
    %c0_0 = arith.constant 0 : index
    %c0_1 = arith.constant 0 : index
    %0 = vector.load %arg1[%c0, %c0_0, %c0_1] : memref<1x16x128xf32, #tpu.memory_space<vmem>>, vector<1x16x128xf32>
    %1 = vector.shape_cast %0 : vector<1x16x128xf32> to vector<16x128xf32>
    %c0_2 = arith.constant 0 : index
    %c0_3 = arith.constant 0 : index
    %c0_4 = arith.constant 0 : index
    %2 = vector.load %arg2[%c0_2, %c0_3, %c0_4] : memref<1x16x128xf32, #tpu.memory_space<vmem>>, vector<1x16x128xf32>
    %3 = vector.shape_cast %2 : vector<1x16x128xf32> to vector<16x128xf32>
    %c0_5 = arith.constant 0 : index
    %c0_6 = arith.constant 0 : index
    %c0_7 = arith.constant 0 : index
    %4 = vector.load %arg3[%c0_5, %c0_6, %c0_7] : memref<1x16x128xf32, #tpu.memory_space<vmem>>, vector<1x16x128xf32>
    %5 = vector.shape_cast %4 : vector<1x16x128xf32> to vector<16x128xf32>
    %c0_8 = arith.constant 0 : index
    %c0_9 = arith.constant 0 : index
    %c0_10 = arith.constant 0 : index
    %6 = vector.load %arg4[%c0_8, %c0_9, %c0_10] : memref<1x16x128xf32, #tpu.memory_space<vmem>>, vector<1x16x128xf32>
    %7 = vector.shape_cast %6 : vector<1x16x128xf32> to vector<16x128xf32>
    %cst = arith.constant dense<0.000000e+00> : vector<16x16xf32>
    %8 = tpu.matmul %5, %7, %cst {dimension_numbers = #tpu.dot_dimension_numbers<[1], [1], [0], [0], [0, 0, 1, 0], [], []>, precision = #tpu.contract_precision<fp32>} : vector<16x128xf32>, vector<16x128xf32>, vector<16x16xf32> -> vector<16x16xf32>
    %cst_11 = arith.constant -2.000000e+00 : f32
    %9 = vector.broadcast %cst_11 : f32 to vector<16x16xf32>
    %10 = arith.mulf %9, %8 : vector<16x16xf32>
    %cst_12 = arith.constant 0.000000e+00 : f32
    %11 = vector.broadcast %cst_12 : f32 to vector<16x16xf32>
    %12 = arith.maximumf %10, %11 : vector<16x16xf32>
    %13 = math.sqrt %12 : vector<16x16xf32>
    %cst_13 = arith.constant 1.000000e+00 : f32
    %14 = vector.broadcast %cst_13 : f32 to vector<16x16xf32>
    %15 = arith.addf %14, %13 : vector<16x16xf32>
    %cst_14 = arith.constant 1.000000e+00 : f32
    %16 = vector.broadcast %cst_14 : f32 to vector<16x16xf32>
    %17 = arith.divf %16, %15 : vector<16x16xf32>
    %c0_15 = arith.constant 0 : index
    %c0_16 = arith.constant 0 : index
    %18 = vector.load %arg5[%c0_15, %c0_16] : memref<16x128xf32, #tpu.memory_space<vmem>>, vector<16x128xf32>
    %cst_17 = arith.constant dense<0.000000e+00> : vector<16x128xf32>
    %19 = tpu.matmul %17, %18, %cst_17 {dimension_numbers = #tpu.dot_dimension_numbers<[1], [0], [0], [1], [0, 0, 1, 1], [], []>, precision = #tpu.contract_precision<fp32>} : vector<16x16xf32>, vector<16x128xf32>, vector<16x128xf32> -> vector<16x128xf32>
    %cst_18 = arith.constant dense<0.000000e+00> : vector<16x128xf32>
    %20 = tpu.matmul %17, %18, %cst_18 {dimension_numbers = #tpu.dot_dimension_numbers<[0], [0], [1], [1], [0, 1, 1, 1], [], []>, precision = #tpu.contract_precision<fp32>} : vector<16x16xf32>, vector<16x128xf32>, vector<16x128xf32> -> vector<16x128xf32>
    %c0_19 = arith.constant 0 : index
    %21 = memref.load %arg6[%c0_19] : memref<18xf32, #tpu.memory_space<smem>>
    %c1 = arith.constant 1 : index
    %22 = memref.load %arg6[%c1] : memref<18xf32, #tpu.memory_space<smem>>
    %c2 = arith.constant 2 : index
    %23 = memref.load %arg6[%c2] : memref<18xf32, #tpu.memory_space<smem>>
    %c3 = arith.constant 3 : index
    %24 = memref.load %arg6[%c3] : memref<18xf32, #tpu.memory_space<smem>>
    %c4 = arith.constant 4 : index
    %25 = memref.load %arg6[%c4] : memref<18xf32, #tpu.memory_space<smem>>
    %c5 = arith.constant 5 : index
    %26 = memref.load %arg6[%c5] : memref<18xf32, #tpu.memory_space<smem>>
    %c6 = arith.constant 6 : index
    %27 = memref.load %arg6[%c6] : memref<18xf32, #tpu.memory_space<smem>>
    %c7 = arith.constant 7 : index
    %28 = memref.load %arg6[%c7] : memref<18xf32, #tpu.memory_space<smem>>
    %c8 = arith.constant 8 : index
    %29 = memref.load %arg6[%c8] : memref<18xf32, #tpu.memory_space<smem>>
    %c9 = arith.constant 9 : index
    %30 = memref.load %arg6[%c9] : memref<18xf32, #tpu.memory_space<smem>>
    %c10 = arith.constant 10 : index
    %31 = memref.load %arg6[%c10] : memref<18xf32, #tpu.memory_space<smem>>
    %c11 = arith.constant 11 : index
    %32 = memref.load %arg6[%c11] : memref<18xf32, #tpu.memory_space<smem>>
    %c12 = arith.constant 12 : index
    %33 = memref.load %arg6[%c12] : memref<18xf32, #tpu.memory_space<smem>>
    %c13 = arith.constant 13 : index
    %34 = memref.load %arg6[%c13] : memref<18xf32, #tpu.memory_space<smem>>
    %c14 = arith.constant 14 : index
    %35 = memref.load %arg6[%c14] : memref<18xf32, #tpu.memory_space<smem>>
    %c15 = arith.constant 15 : index
    %36 = memref.load %arg6[%c15] : memref<18xf32, #tpu.memory_space<smem>>
    %c16 = arith.constant 16 : index
    %37 = memref.load %arg6[%c16] : memref<18xf32, #tpu.memory_space<smem>>
    %c17 = arith.constant 17 : index
    %38 = memref.load %arg6[%c17] : memref<18xf32, #tpu.memory_space<smem>>
    %c0_20 = arith.constant 0 : index
    %39 = memref.load %arg7[%c0_20] : memref<1xf32, #tpu.memory_space<smem>>
    %40 = tpu.iota {dimensions = array<i32: 0>} : vector<16x128xi32>
    %c0_i32 = arith.constant 0 : i32
    %41 = vector.broadcast %c0_i32 : i32 to vector<16x128xi32>
    %42 = arith.cmpi sgt, %40, %41 : vector<16x128xi32>
    %43 = arith.extui %42 : vector<16x128xi1> to vector<16x128xi32>
    %44 = arith.sitofp %43 : vector<16x128xi32> to vector<16x128xf32>
    %c15_i32 = arith.constant 15 : i32
    %45 = vector.broadcast %c15_i32 : i32 to vector<16x128xi32>
    %46 = arith.cmpi slt, %40, %45 : vector<16x128xi32>
    %47 = arith.extui %46 : vector<16x128xi1> to vector<16x128xi32>
    %48 = arith.sitofp %47 : vector<16x128xi32> to vector<16x128xf32>
    %c1_i32 = arith.constant 1 : i32
    %49 = tpu.dynamic_rotate %1 by %c1_i32 dim 1 : vector<16x128xf32>, i32 -> vector<16x128xf32>
    %c127_i32 = arith.constant 127 : i32
    %50 = tpu.dynamic_rotate %1 by %c127_i32 dim 1 : vector<16x128xf32>, i32 -> vector<16x128xf32>
    %c1_i32_21 = arith.constant 1 : i32
    %51 = tpu.dynamic_rotate %19 by %c1_i32_21 dim 1 : vector<16x128xf32>, i32 -> vector<16x128xf32>
    %c127_i32_22 = arith.constant 127 : i32
    %52 = tpu.dynamic_rotate %19 by %c127_i32_22 dim 1 : vector<16x128xf32>, i32 -> vector<16x128xf32>
    %53 = vector.broadcast %21 : f32 to vector<16x128xf32>
    %54 = arith.mulf %53, %49 : vector<16x128xf32>
    %55 = vector.broadcast %22 : f32 to vector<16x128xf32>
    %56 = arith.mulf %55, %1 : vector<16x128xf32>
    %57 = arith.addf %54, %56 : vector<16x128xf32>
    %58 = vector.broadcast %23 : f32 to vector<16x128xf32>
    %59 = arith.mulf %58, %50 : vector<16x128xf32>
    %60 = arith.addf %57, %59 : vector<16x128xf32>
    %61 = vector.broadcast %30 : f32 to vector<16x128xf32>
    %62 = arith.mulf %61, %51 : vector<16x128xf32>
    %63 = arith.addf %60, %62 : vector<16x128xf32>
    %64 = vector.broadcast %31 : f32 to vector<16x128xf32>
    %65 = arith.mulf %64, %19 : vector<16x128xf32>
    %66 = arith.addf %63, %65 : vector<16x128xf32>
    %67 = vector.broadcast %32 : f32 to vector<16x128xf32>
    %68 = arith.mulf %67, %52 : vector<16x128xf32>
    %69 = arith.addf %66, %68 : vector<16x128xf32>
    %70 = vector.broadcast %24 : f32 to vector<16x128xf32>
    %71 = arith.mulf %70, %49 : vector<16x128xf32>
    %72 = vector.broadcast %25 : f32 to vector<16x128xf32>
    %73 = arith.mulf %72, %1 : vector<16x128xf32>
    %74 = arith.addf %71, %73 : vector<16x128xf32>
    %75 = vector.broadcast %26 : f32 to vector<16x128xf32>
    %76 = arith.mulf %75, %50 : vector<16x128xf32>
    %77 = arith.addf %74, %76 : vector<16x128xf32>
    %78 = vector.broadcast %33 : f32 to vector<16x128xf32>
    %79 = arith.mulf %78, %51 : vector<16x128xf32>
    %80 = arith.addf %77, %79 : vector<16x128xf32>
    %81 = vector.broadcast %34 : f32 to vector<16x128xf32>
    %82 = arith.mulf %81, %19 : vector<16x128xf32>
    %83 = arith.addf %80, %82 : vector<16x128xf32>
    %84 = vector.broadcast %35 : f32 to vector<16x128xf32>
    %85 = arith.mulf %84, %52 : vector<16x128xf32>
    %86 = arith.addf %83, %85 : vector<16x128xf32>
    %87 = vector.broadcast %27 : f32 to vector<16x128xf32>
    %88 = arith.mulf %87, %49 : vector<16x128xf32>
    %89 = vector.broadcast %28 : f32 to vector<16x128xf32>
    %90 = arith.mulf %89, %1 : vector<16x128xf32>
    %91 = arith.addf %88, %90 : vector<16x128xf32>
    %92 = vector.broadcast %29 : f32 to vector<16x128xf32>
    %93 = arith.mulf %92, %50 : vector<16x128xf32>
    %94 = arith.addf %91, %93 : vector<16x128xf32>
    %95 = vector.broadcast %36 : f32 to vector<16x128xf32>
    %96 = arith.mulf %95, %51 : vector<16x128xf32>
    %97 = arith.addf %94, %96 : vector<16x128xf32>
    %98 = vector.broadcast %37 : f32 to vector<16x128xf32>
    %99 = arith.mulf %98, %19 : vector<16x128xf32>
    %100 = arith.addf %97, %99 : vector<16x128xf32>
    %101 = vector.broadcast %38 : f32 to vector<16x128xf32>
    %102 = arith.mulf %101, %52 : vector<16x128xf32>
    %103 = arith.addf %100, %102 : vector<16x128xf32>
    %c1_i32_23 = arith.constant 1 : i32
    %104 = tpu.dynamic_rotate %69 by %c1_i32_23 dim 0 : vector<16x128xf32>, i32 -> vector<16x128xf32>
    %105 = arith.mulf %104, %44 : vector<16x128xf32>
    %106 = arith.addf %105, %86 : vector<16x128xf32>
    %c15_i32_24 = arith.constant 15 : i32
    %107 = tpu.dynamic_rotate %103 by %c15_i32_24 dim 0 : vector<16x128xf32>, i32 -> vector<16x128xf32>
    %108 = arith.mulf %107, %48 : vector<16x128xf32>
    %109 = arith.addf %106, %108 : vector<16x128xf32>
    %110 = vector.broadcast %39 : f32 to vector<16x128xf32>
    %111 = arith.addf %109, %110 : vector<16x128xf32>
    %112 = math.tanh %111 : vector<16x128xf32>
    %c0_25 = arith.constant 0 : index
    %c0_26 = arith.constant 0 : index
    %c0_27 = arith.constant 0 : index
    %113 = vector.load %arg8[%c0_25, %c0_26, %c0_27] : memref<1x16x128xf32, #tpu.memory_space<vmem>>, vector<1x16x128xf32>
    %114 = vector.shape_cast %113 : vector<1x16x128xf32> to vector<16x128xf32>
    %115 = vector.shape_cast %112 : vector<16x128xf32> to vector<1x16x128xf32>
    tpu.vector_store %arg8[%c0_25, %c0_26, %c0_27], %115 {strides = array<i32>} : memref<1x16x128xf32, #tpu.memory_space<vmem>>, vector<1x16x128xf32>,
    %c1_i32_28 = arith.constant 1 : i32
    %116 = tpu.dynamic_rotate %3 by %c1_i32_28 dim 1 : vector<16x128xf32>, i32 -> vector<16x128xf32>
    %c127_i32_29 = arith.constant 127 : i32
    %117 = tpu.dynamic_rotate %3 by %c127_i32_29 dim 1 : vector<16x128xf32>, i32 -> vector<16x128xf32>
    %c1_i32_30 = arith.constant 1 : i32
    %118 = tpu.dynamic_rotate %20 by %c1_i32_30 dim 1 : vector<16x128xf32>, i32 -> vector<16x128xf32>
    %c127_i32_31 = arith.constant 127 : i32
    %119 = tpu.dynamic_rotate %20 by %c127_i32_31 dim 1 : vector<16x128xf32>, i32 -> vector<16x128xf32>
    %120 = vector.broadcast %21 : f32 to vector<16x128xf32>
    %121 = arith.mulf %120, %116 : vector<16x128xf32>
    %122 = vector.broadcast %22 : f32 to vector<16x128xf32>
    %123 = arith.mulf %122, %3 : vector<16x128xf32>
    %124 = arith.addf %121, %123 : vector<16x128xf32>
    %125 = vector.broadcast %23 : f32 to vector<16x128xf32>
    %126 = arith.mulf %125, %117 : vector<16x128xf32>
    %127 = arith.addf %124, %126 : vector<16x128xf32>
    %128 = vector.broadcast %30 : f32 to vector<16x128xf32>
    %129 = arith.mulf %128, %118 : vector<16x128xf32>
    %130 = arith.addf %127, %129 : vector<16x128xf32>
    %131 = vector.broadcast %31 : f32 to vector<16x128xf32>
    %132 = arith.mulf %131, %20 : vector<16x128xf32>
    %133 = arith.addf %130, %132 : vector<16x128xf32>
    %134 = vector.broadcast %32 : f32 to vector<16x128xf32>
    %135 = arith.mulf %134, %119 : vector<16x128xf32>
    %136 = arith.addf %133, %135 : vector<16x128xf32>
    %137 = vector.broadcast %24 : f32 to vector<16x128xf32>
    %138 = arith.mulf %137, %116 : vector<16x128xf32>
    %139 = vector.broadcast %25 : f32 to vector<16x128xf32>
    %140 = arith.mulf %139, %3 : vector<16x128xf32>
    %141 = arith.addf %138, %140 : vector<16x128xf32>
    %142 = vector.broadcast %26 : f32 to vector<16x128xf32>
    %143 = arith.mulf %142, %117 : vector<16x128xf32>
    %144 = arith.addf %141, %143 : vector<16x128xf32>
    %145 = vector.broadcast %33 : f32 to vector<16x128xf32>
    %146 = arith.mulf %145, %118 : vector<16x128xf32>
    %147 = arith.addf %144, %146 : vector<16x128xf32>
    %148 = vector.broadcast %34 : f32 to vector<16x128xf32>
    %149 = arith.mulf %148, %20 : vector<16x128xf32>
    %150 = arith.addf %147, %149 : vector<16x128xf32>
    %151 = vector.broadcast %35 : f32 to vector<16x128xf32>
    %152 = arith.mulf %151, %119 : vector<16x128xf32>
    %153 = arith.addf %150, %152 : vector<16x128xf32>
    %154 = vector.broadcast %27 : f32 to vector<16x128xf32>
    %155 = arith.mulf %154, %116 : vector<16x128xf32>
    %156 = vector.broadcast %28 : f32 to vector<16x128xf32>
    %157 = arith.mulf %156, %3 : vector<16x128xf32>
    %158 = arith.addf %155, %157 : vector<16x128xf32>
    %159 = vector.broadcast %29 : f32 to vector<16x128xf32>
    %160 = arith.mulf %159, %117 : vector<16x128xf32>
    %161 = arith.addf %158, %160 : vector<16x128xf32>
    %162 = vector.broadcast %36 : f32 to vector<16x128xf32>
    %163 = arith.mulf %162, %118 : vector<16x128xf32>
    %164 = arith.addf %161, %163 : vector<16x128xf32>
    %165 = vector.broadcast %37 : f32 to vector<16x128xf32>
    %166 = arith.mulf %165, %20 : vector<16x128xf32>
    %167 = arith.addf %164, %166 : vector<16x128xf32>
    %168 = vector.broadcast %38 : f32 to vector<16x128xf32>
    %169 = arith.mulf %168, %119 : vector<16x128xf32>
    %170 = arith.addf %167, %169 : vector<16x128xf32>
    %c1_i32_32 = arith.constant 1 : i32
    %171 = tpu.dynamic_rotate %136 by %c1_i32_32 dim 0 : vector<16x128xf32>, i32 -> vector<16x128xf32>
    %172 = arith.mulf %171, %44 : vector<16x128xf32>
    %173 = arith.addf %172, %153 : vector<16x128xf32>
    %c15_i32_33 = arith.constant 15 : i32
    %174 = tpu.dynamic_rotate %170 by %c15_i32_33 dim 0 : vector<16x128xf32>, i32 -> vector<16x128xf32>
    %175 = arith.mulf %174, %48 : vector<16x128xf32>
    %176 = arith.addf %173, %175 : vector<16x128xf32>
    %177 = vector.broadcast %39 : f32 to vector<16x128xf32>
    %178 = arith.addf %176, %177 : vector<16x128xf32>
    %179 = math.tanh %178 : vector<16x128xf32>
    %c0_34 = arith.constant 0 : index
    %c0_35 = arith.constant 0 : index
    %c0_36 = arith.constant 0 : index
    %180 = vector.load %arg9[%c0_34, %c0_35, %c0_36] : memref<1x16x128xf32, #tpu.memory_space<vmem>>, vector<1x16x128xf32>
    %181 = vector.shape_cast %180 : vector<1x16x128xf32> to vector<16x128xf32>
    %182 = vector.shape_cast %179 : vector<16x128xf32> to vector<1x16x128xf32>
    tpu.vector_store %arg9[%c0_34, %c0_35, %c0_36], %182 {strides = array<i32>} : memref<1x16x128xf32, #tpu.memory_space<vmem>>, vector<1x16x128xf32>,
    return
  }
  func.func @transform_0(%arg0: i32) -> (i32, i32, i32) {
    %c0_i32 = arith.constant 0 : i32
    %c0_i32_0 = arith.constant 0 : i32
    %c0_i32_1 = arith.constant 0 : i32
    return %arg0, %c0_i32, %c0_i32_0 : i32, i32, i32
  }
  func.func @transform_1(%arg0: i32) -> (i32, i32, i32) {
    %c0_i32 = arith.constant 0 : i32
    %c0_i32_0 = arith.constant 0 : i32
    %c0_i32_1 = arith.constant 0 : i32
    return %arg0, %c0_i32, %c0_i32_0 : i32, i32, i32
  }
  func.func @transform_2(%arg0: i32) -> (i32, i32, i32) {
    %c0_i32 = arith.constant 0 : i32
    %c0_i32_0 = arith.constant 0 : i32
    %c0_i32_1 = arith.constant 0 : i32
    return %arg0, %c0_i32, %c0_i32_0 : i32, i32, i32
  }
  func.func @transform_3(%arg0: i32) -> (i32, i32, i32) {
    %c0_i32 = arith.constant 0 : i32
    %c0_i32_0 = arith.constant 0 : i32
    %c0_i32_1 = arith.constant 0 : i32
    return %arg0, %c0_i32, %c0_i32_0 : i32, i32, i32
  }
  func.func @transform_4(%arg0: i32) -> (i32, i32) {
    %c0_i32 = arith.constant 0 : i32
    %c0_i32_0 = arith.constant 0 : i32
    %c0_i32_1 = arith.constant 0 : i32
    return %c0_i32, %c0_i32_0 : i32, i32
  }
  func.func @transform_5(%arg0: i32) -> i32 {
    %c0_i32 = arith.constant 0 : i32
    %c0_i32_0 = arith.constant 0 : i32
    return %c0_i32 : i32
  }
  func.func @transform_6(%arg0: i32) -> i32 {
    %c0_i32 = arith.constant 0 : i32
    %c0_i32_0 = arith.constant 0 : i32
    return %c0_i32 : i32
  }
  func.func @transform_7(%arg0: i32) -> (i32, i32, i32) {
    %c0_i32 = arith.constant 0 : i32
    %c0_i32_0 = arith.constant 0 : i32
    %c0_i32_1 = arith.constant 0 : i32
    return %arg0, %c0_i32, %c0_i32_0 : i32, i32, i32
  }
  func.func @transform_8(%arg0: i32) -> (i32, i32, i32) {
    %c0_i32 = arith.constant 0 : i32
    %c0_i32_0 = arith.constant 0 : i32
    %c0_i32_1 = arith.constant 0 : i32
    return %arg0, %c0_i32, %c0_i32_0 : i32, i32, i32
  }
}

</mosaic_0001>

<bundles_post_ra>
// kernel: tpu_custom_call.1
= control target key start
LH: loop header
LB: loop body
LE: loop exit
PB: predicated region body
PF: predicated region fallthrough
CT: control target
= control target key end

     0   :  { %s3984_s0 = inlined_call_operand.hbm [shape: f32[2,16,128], index: 0, kind: input, shape index: {}]   ;;  %s3985_s1 = inlined_call_operand.hbm [shape: f32[2,16,128], index: 1, kind: input, shape index: {}]   ;;  %s3986_s2 = inlined_call_operand.hbm [shape: f32[2,16,128], index: 2, kind: input, shape index: {}]   ;;  %s3987_s3 = inlined_call_operand.hbm [shape: f32[2,16,128], index: 3, kind: input, shape index: {}]   ;;  %s3988_s4 = inlined_call_operand.hbm [shape: f32[16,128], index: 4, kind: input, shape index: {}]   ;;  %s3989_s5 = inlined_call_operand.vmem [shape: f32[18], index: 5, kind: input, shape index: {}]   ;;  %s3990_s6 = inlined_call_operand.<no memory space> [shape: f32[1], index: 6, kind: input, shape index: {}]   ;;  %s3991_s7 = inlined_call_operand.hbm [shape: f32[2,16,128], index: 7, kind: output, shape index: {0}]   ;;  %s3992_s8 = inlined_call_operand.hbm [shape: f32[2,16,128], index: 8, kind: output, shape index: {1}]  }
   0x1   :  { %4011 = sst [smem:[#allocation28_spill]] %s3984_s0 }
   0x2   :  { %4012 = sst [smem:[#allocation29_spill]] %s3985_s1 }
   0x3   :  { %4013 = sst [smem:[#allocation30_spill]] %s3988_s4 }
   0x4   :  { %4014 = sst [smem:[#allocation31_spill]] %s3989_s5 }
   0x5   :  { %4015 = sst [smem:[#allocation32_spill]] %s3992_s8 }
   0x6   :  { %14 = sst [smem:[#allocation2]] %s3990_s6 }
   0x7   :  { %15 = vsyncpa [#allocation4], 0 }
   0x8   :  { %17 = vsyncpa [#allocation4 + $0x1], 0 }
   0x9   :  { %18 = vsyncpa [#allocation8], 0 }
   0xa   :  { %20 = vsyncpa [#allocation8 + $0x1], 0 }
   0xb   :  { %21 = vsyncpa [#allocation11], 0 }
   0xc   :  { %23 = vsyncpa [#allocation11 + $0x1], 0 }
   0xd   :  { %24 = vsyncpa [#allocation6], 0 }
   0xe   :  { %25 = vsyncpa [#allocation5], 0 }
   0xf   :  { %27 = vsyncpa [#allocation5 + $0x1], 0 }
  0x10   :  { %28 = vsyncpa [#allocation16], 0 }
  0x11   :  { %30 = vsyncpa [#allocation16 + $0x1], 0  ;;  %s3251_s29 = smov 0   ;;  %s3253_s30 = smov 0  }
  0x12   :  { %s3255_s9 = smov 0   ;;  %s3257_s10 = smov 0  }
  0x13 LB: > { %4016 = sst [smem:[#allocation24_spill]] %s3174_s29  ;;  %s3272_s6 = sadd.s32 4294967295, %s3186_s10   ;;  %s3186_s10 = sphi %s3257_s10, %s4050_s10   ;;  %s3182_s9 = sphi %s3255_s9, %s4054_s9   ;;  %s3178_s30 = sphi %s3253_s30, %s4053_s30   ;;  %s3174_s29 = sphi %s3251_s29, %s4052_s29  }
  0x14   : > { %s2556_s11 = sadd.s32 4294967294, %s3186_s10   ;;  %s3276_s12 = sadd.s32 1, %s3186_s10  }
  0x15   : > { %4017 = sst [smem:[#allocation25_spill]] %s3276_s12  ;;  %s43_s13 = sadd.s32 1, %s3182_s9 }
  0x16   : > { %s40_s14 = ssub.s32 %s3186_s10, %s3276_s12  ;;  %p50_p0 = scmp.ne.s32.totalorder %s3182_s9, %s3178_s30 }
  0x17   : > { %p41_p1 = scmp.eq.s32.totalorder %s40_s14, 0  ;;  %p51_p2 = scmp.eq.s32.totalorder %s3186_s10, 0 }
  0x18   : > { %p56_p3 = scmp.ne.s32.totalorder %s3178_s30, %s3174_s29  ;;  %p3993_p4 = scmp.eq.s32.totalorder %s3272_s6, 0 }
  0x19   : > { %s3288_s15 = scalar_select %p41_p1, %s3182_s9, %s43_s13  }
  0x1a   : > { %p3290_p5 = por %p51_p2, %p50_p0  ;;  %p3296_p6 = por %p3993_p4, %p56_p3 }
  0x1b   : > { %4018 = sst [smem:[#allocation26_spill]] %s3288_s15  ;;  %p221_p7 = scmp.eq.s32.totalorder %s3272_s6, 1 }
  0x1c   : > { %s4020_s17 = scalar_select %p3296_p6, 1, 0 }
  0x1d   : > { %p227_p8 = scmp.eq.s32.totalorder %s2556_s11, 1  ;;  %p2557_p9 = scmp.ge.s32.totalorder %s3186_s10, 1 }
  0x1e   : > { %p260_p10 = scmp.lt.s32.totalorder %s3186_s10, 3  ;;  %p3303_p11 = por %p221_p7, %p50_p0 }
  0x1f   : > { %p3307_p12 = por %p227_p8, %p56_p3  ;;  %s3188_s21 = smov [#allocation12]  }
  0x20   : > { %s4021_s18 = scalar_select %p3303_p11, 1, 0 }
  0x21   : > { %s4022_s19 = scalar_select %p3307_p12, 1, 0 }
  0x22   : > { %p3311_p13 = pnand %p2557_p9, %p260_p10  ;;  %s272_s22 = sshll.u32 %s3188_s21, 4  ;;  %s273_s22 = int_to_ptr.vmem [resolvable:$true] %s272_s22 }
  0x23   : > { %4023 = sst [smem:[#allocation27_spill]] %s4022_s19  ;;  %p2862_p3 = scmp.lt.s32.totalorder %s3186_s10, 2 }
  0x24   : > { %s4024_s20 = scalar_select %p3311_p13, 1, 0 }
  0x25   : > { %p2833_p1 = pneg %p3311_p13  ;;  %s3995_s24 = sand.u32 1, %s3182_s9  }
  0x26   : > { %s3328_s25 = sshll.u32 %s3995_s24, 4  ;;  %s2934_s26 = scalar_lea.vmem %s273_s22, 256 }
  0x27   : > { %p3319_p2 = pnand %p2833_p1, %p3993_p4  ;;  %p2935_p8 = scmp.ne.s32.totalorder %s273_s22, %s2934_s26 }
  0x28   : > { %p2942_p1 = scmp.lt.s32.totalorder %s273_s22, %s273_s22  ;;  %p2943_p4 = scmp.lt.s32.totalorder %s2934_s26, %s2934_s26 }
  0x29   : > { %s4025_s23 = scalar_select %p3319_p2, 1, 0 }
  0x2a   : > { %p4004_p7 = pneg %p3319_p2  ;;  %p2944_p12 = por %p2943_p4, %p2942_p1 }
  0x2c   : > { %p2937_p9 = pnand %p2935_p8, %p4004_p7 }
  0x2e   : > { %p2938_p10 = pneg %p2937_p9 }
  0x30   : > { %p2945_p11 = pnand %p2944_p12, %p2938_p10 }
  0x32   : > { %2948 = shalt.err (!%p2945_p11)
}
  0x33   : > { %s3998_s27 = smov 128   ;;  %s4000_s28 = smov 8  }
  0x34   : > { %s4026_s4 = sld [smem:[#allocation30_spill]]  ;;  %s3344_s14 = sshll.u32 %s3186_s10, 8 }
  0x35   : > { %p3350_p4 = pnand %p2862_p3, %p3290_p5  ;;  %s4002_s26 = sand.u32 1, %s3186_s10  }
  0x36   : > { %s4028_s1 = sld [smem:[#allocation29_spill]]  ;;  %s3366_s16 = scalar_lea.sflag [#allocation8], %s4002_s26 }
  0x37   : > { %p3372_p11 = pneg %p3350_p4 }
  0x3a   : > { %2836 = dma.hbm_to_vmem [thread:$0]  (!%p3319_p2), %s4026_s4, 256, %s273_s22, [#allocation11], %s3998_s27, %s3998_s27, %s4000_s28  }
  0x3b   : > { %s325_s22 = scalar_lea.vmem [#allocation7], %s3328_s25 }
  0x3c   : > { %s3359_s12 = scalar_lea.hbm %s4028_s1, %s3344_s14  ;;  %s332_s11 = sshll.u32 %s325_s22, 4  ;;  %s3362_s11 = int_to_ptr.vmem [resolvable:$true] %s332_s11 }
  0x3d   : > { %s2949_s13 = scalar_lea.hbm %s3359_s12, 256  ;;  %s2954_s22 = scalar_lea.hbm %s4028_s1, 512 }
  0x3e   : > { %p2950_p5 = scmp.ne.s32.totalorder %s3359_s12, %s2949_s13  ;;  %p2955_p8 = scmp.lt.s32.totalorder %s3359_s12, %s4028_s1 }
  0x3f   : > { %p2956_p9 = scmp.lt.s32.totalorder %s2954_s22, %s2949_s13 }
  0x40   : > { %p2952_p12 = pnand %p3372_p11, %p2950_p5 }
  0x41   : > { %p2957_p10 = por %p2956_p9, %p2955_p8 }
  0x42   : > { %p2953_p3 = pneg %p2952_p12 }
  0x44   : > { %p2958_p1 = pnand %p2957_p10, %p2953_p3 }
  0x46   : > { %2961 = shalt.err (!%p2958_p1)
}
  0x47   : > { %s2962_s26 = scalar_lea.vmem %s3362_s11, 256  ;;  %s3191_s19 = smov [#allocation7]  }
  0x48   : > { %p2963_p0 = scmp.ne.s32.totalorder %s3362_s11, %s2962_s26  ;;  %s2967_s15 = sshll.u32 %s3191_s19, 4  ;;  %s2968_s15 = int_to_ptr.vmem [resolvable:$false] %s2967_s15 }
  0x49   : > { %s2969_s24 = scalar_lea.vmem %s2968_s15, 512  ;;  %p2970_p7 = scmp.lt.s32.totalorder %s3362_s11, %s2968_s15 }
  0x4a   : > { %p2965_p5 = pnand %p2963_p0, %p3372_p11  ;;  %p2971_p6 = scmp.lt.s32.totalorder %s2969_s24, %s2962_s26 }
  0x4c   : > { %p2966_p12 = pneg %p2965_p5  ;;  %p2972_p13 = por %p2971_p6, %p2970_p7 }
  0x4e   : > { %p2973_p2 = pnand %p2972_p13, %p2966_p12 }
  0x50   : > { %2976 = shalt.err (!%p2973_p2)
}
  0x51   : > { %s4030_s4 = smov 8   ;;  %s4031_s28 = smov 128  }
  0x52   : > { %2846 = dma.hbm_to_vmem [thread:$0]  (!%p3350_p4), %s3359_s12, 256, %s3362_s11, %s3366_s16, %s4031_s28, %s4031_s28, %s4030_s4  }
  0x53   : > { %s4032_s5 = sld [smem:[#allocation31_spill]]  ;;  %p4033_p6 = scmp.ne.s32.totalorder %s4025_s23, 0 }
  0x55   : > { %p4034_p13 = pneg %p4033_p6 }
  0x59   : > { %s286_s19 = sshll.u32 %s4032_s5, 4  ;;  %s287_s19 = int_to_ptr.vmem [resolvable:$true] %s286_s19 }
  0x5a   : > { %s2977_s15 = scalar_lea.vmem %s287_s19, 16  ;;  %p2985_p3 = scmp.lt.s32.totalorder %s287_s19, %s287_s19 }
  0x5b   : > { %p2978_p0 = scmp.ne.s32.totalorder %s287_s19, %s2977_s15  ;;  %p2986_p8 = scmp.lt.s32.totalorder %s2977_s15, %s2977_s15 }
  0x5d   : > { %p2980_p2 = pnand %p2978_p0, %p4034_p13  ;;  %p2987_p9 = por %p2986_p8, %p2985_p3 }
  0x5f   : > { %p2981_p7 = pneg %p2980_p2 }
  0x61   : > { %p2988_p10 = pnand %p2987_p9, %p2981_p7 }
  0x63   : > { %2991 = shalt.err (!%p2988_p10)
}
  0x64   : > { %s3192_s26 = smov [#allocation13]   ;;  %s4035_s0 = sld [smem:[#allocation28_spill]] }
  0x65   : > { %2839 = dma.vmem_to_smem (!%p4033_p6), %s287_s19, 16, %s3192_s26, [#allocation6]  }
  0x66   : > { %s304_s13 = scalar_lea.vmem [#allocation3], %s3328_s25  ;;  %s3419_s1 = scalar_lea.hbm %s3986_s2, %s3344_s14 }
  0x67   : > { %s311_s22 = sshll.u32 %s304_s13, 4  ;;  %s4036_s5 = sand.u32 1, %s3182_s9   ;;  %s3413_s22 = int_to_ptr.vmem [resolvable:$true] %s311_s22 }
  0x68   : > { %s301_s29 = scalar_lea.sflag [#allocation4], %s4036_s5 }
  0x6a   : > { %s3410_s24 = scalar_lea.hbm %s4035_s0, %s3344_s14  ;;  %s2997_s11 = scalar_lea.hbm %s4035_s0, 512 }
  0x6b   : > { %s2992_s19 = scalar_lea.hbm %s3410_s24, 256  ;;  %p2998_p0 = scmp.lt.s32.totalorder %s3410_s24, %s4035_s0 }
  0x6c   : > { %p2993_p1 = scmp.ne.s32.totalorder %s3410_s24, %s2992_s19  ;;  %p2999_p6 = scmp.lt.s32.totalorder %s2997_s11, %s2992_s19 }
  0x6e   : > { %p2995_p5 = pnand %p2993_p1, %p3372_p11  ;;  %p3000_p13 = por %p2999_p6, %p2998_p0 }
  0x70   : > { %p2996_p12 = pneg %p2995_p5 }
  0x72   : > { %p3001_p2 = pnand %p3000_p13, %p2996_p12 }
  0x74   : > { %3004 = shalt.err (!%p3001_p2)
}
  0x75   : > { %s3005_s5 = scalar_lea.vmem %s3413_s22, 256  ;;  %s3193_s15 = smov [#allocation3]  }
  0x76   : > { %p3006_p7 = scmp.ne.s32.totalorder %s3413_s22, %s3005_s5  ;;  %s3010_s23 = sshll.u32 %s3193_s15, 4  ;;  %s3011_s23 = int_to_ptr.vmem [resolvable:$false] %s3010_s23 }
  0x77   : > { %s3012_s26 = scalar_lea.vmem %s3011_s23, 512  ;;  %p3013_p9 = scmp.lt.s32.totalorder %s3413_s22, %s3011_s23 }
  0x78   : > { %p3008_p3 = pnand %p3006_p7, %p3372_p11  ;;  %p3014_p10 = scmp.lt.s32.totalorder %s3012_s26, %s3005_s5 }
  0x7a   : > { %p3009_p8 = pneg %p3008_p3  ;;  %p3015_p1 = por %p3014_p10, %p3013_p9 }
  0x7c   : > { %p3016_p5 = pnand %p3015_p1, %p3009_p8 }
  0x7e   : > { %3019 = shalt.err (!%p3016_p5)
}
  0x7f   : > { %2843 = dma.hbm_to_vmem [thread:$0]  (!%p3350_p4), %s3410_s24, 256, %s3413_s22, %s301_s29, %s4031_s28, %s4031_s28, %s4030_s4  }
  0x80   : > { %s346_s8 = scalar_lea.vmem [#allocation9], %s3328_s25  ;;  %s3453_s13 = scalar_lea.hbm %s3987_s3, %s3344_s14 }
  0x81   : > { %s353_s19 = sshll.u32 %s346_s8, 4  ;;  %s3020_s5 = scalar_lea.hbm %s3419_s1, 256  ;;  %s3447_s19 = int_to_ptr.vmem [resolvable:$true] %s353_s19 }
  0x82   : > { %p3021_p12 = scmp.ne.s32.totalorder %s3419_s1, %s3020_s5  ;;  %s3025_s26 = scalar_lea.hbm %s3986_s2, 512 }
  0x83   : > { %p3026_p13 = scmp.lt.s32.totalorder %s3419_s1, %s3986_s2  ;;  %p3027_p2 = scmp.lt.s32.totalorder %s3025_s26, %s3020_s5 }
  0x84   : > { %p3023_p0 = pnand %p3021_p12, %p3372_p11 }
  0x85   : > { %p3028_p7 = por %p3027_p2, %p3026_p13 }
  0x86   : > { %p3024_p6 = pneg %p3023_p0 }
  0x88   : > { %p3029_p3 = pnand %p3028_p7, %p3024_p6 }
  0x8a   : > { %3032 = shalt.err (!%p3029_p3)
}
  0x8b   : > { %s3033_s14 = scalar_lea.vmem %s3447_s19, 256  ;;  %s3194_s24 = smov [#allocation9]  }
  0x8c   : > { %p3034_p8 = scmp.ne.s32.totalorder %s3447_s19, %s3033_s14  ;;  %s3038_s22 = sshll.u32 %s3194_s24, 4  ;;  %s3039_s22 = int_to_ptr.vmem [resolvable:$false] %s3038_s22 }
  0x8d   : > { %s3040_s8 = scalar_lea.vmem %s3039_s22, 512  ;;  %p3041_p1 = scmp.lt.s32.totalorder %s3447_s19, %s3039_s22 }
  0x8e   : > { %p3036_p9 = pnand %p3034_p8, %p3372_p11  ;;  %p3042_p5 = scmp.lt.s32.totalorder %s3040_s8, %s3033_s14 }
  0x90   : > { %p3037_p10 = pneg %p3036_p9  ;;  %p3043_p12 = por %p3042_p5, %p3041_p1 }
  0x92   : > { %p3044_p0 = pnand %p3043_p12, %p3037_p10 }
  0x94   : > { %3047 = shalt.err (!%p3044_p0)
}
  0x95   : > { %2849 = dma.hbm_to_vmem [thread:$0]  (!%p3350_p4), %s3419_s1, 256, %s3447_s19, %s3366_s16, %s4031_s28, %s4031_s28, %s4030_s4  }
  0x96   : > { %s367_s0 = scalar_lea.vmem [#allocation10], %s3328_s25  ;;  %s4037_s11 = sand.u32 1, %s3186_s10  }
  0x97   : > { %s374_s12 = sshll.u32 %s367_s0, 4  ;;  %s364_s5 = scalar_lea.sflag [#allocation11], %s4037_s11  ;;  %s3480_s12 = int_to_ptr.vmem [resolvable:$true] %s374_s12 }
  0x98   : > { %s3048_s15 = scalar_lea.hbm %s3453_s13, 256  ;;  %s3053_s29 = scalar_lea.hbm %s3987_s3, 512 }
  0x99   : > { %p3049_p6 = scmp.ne.s32.totalorder %s3453_s13, %s3048_s15  ;;  %p3054_p7 = scmp.lt.s32.totalorder %s3453_s13, %s3987_s3 }
  0x9a   : > { %p3055_p3 = scmp.lt.s32.totalorder %s3053_s29, %s3048_s15 }
  0x9b   : > { %p3051_p13 = pnand %p3049_p6, %p3372_p11 }
  0x9c   : > { %p3056_p8 = por %p3055_p3, %p3054_p7 }
  0x9d   : > { %p3052_p2 = pneg %p3051_p13 }
  0x9f   : > { %p3057_p9 = pnand %p3056_p8, %p3052_p2 }
  0xa1   : > { %3060 = shalt.err (!%p3057_p9)
}
  0xa2   : > { %s3061_s1 = scalar_lea.vmem %s3480_s12, 256  ;;  %s3195_s25 = smov [#allocation10]  }
  0xa3   : > { %p3062_p10 = scmp.ne.s32.totalorder %s3480_s12, %s3061_s1  ;;  %s3066_s16 = sshll.u32 %s3195_s25, 4  ;;  %s3067_s16 = int_to_ptr.vmem [resolvable:$false] %s3066_s16 }
  0xa4   : > { %s3068_s19 = scalar_lea.vmem %s3067_s16, 512  ;;  %p3069_p12 = scmp.lt.s32.totalorder %s3480_s12, %s3067_s16 }
  0xa5   : > { %p3064_p1 = pnand %p3062_p10, %p3372_p11  ;;  %p3070_p0 = scmp.lt.s32.totalorder %s3068_s19, %s3061_s1 }
  0xa7   : > { %p3065_p5 = pneg %p3064_p1  ;;  %p3071_p6 = por %p3070_p0, %p3069_p12 }
  0xa9   : > { %p3072_p13 = pnand %p3071_p6, %p3065_p5 }
  0xab   : > { %3075 = shalt.err (!%p3072_p13)
}
  0xac   : > { %2852 = dma.hbm_to_vmem [thread:$0]  (!%p3350_p4), %s3453_s13, 256, %s3480_s12, %s364_s5, %s4031_s28, %s4031_s28, %s4030_s4  }
  0xad   : > { %p4038_p11 = scmp.ne.s32.totalorder %s4024_s20, 0 }
  0xae   : > { %s3510_s27 = sand.u32 (!%p4038_p11), 1, %s3178_s30   ;;  %p4039_p2 = scmp.ne.s32.totalorder (!%p4038_p11), %s4020_s17, 0 }
  0xaf   : > { %386 = sbr.rel (%p4038_p11) target bundleno = 976 (0x3d0), region = 48  ;;  %s3513_s22 = sshll.u32 (!%p4038_p11), %s3510_s27, 4 }
  0xb0   : > { %s389_s8 = scalar_lea.sflag (!%p4038_p11), [#allocation4], %s3510_s27  ;;  %s392_s21 = scalar_lea.vmem (!%p4038_p11), [#allocation3], %s3513_s22 }
  0xb4   : > { %3145 = dma.done.wait (%p4039_p2), %s389_s8, 256  }
  0xb5   : > { %3147 = vsyncadd (%p4039_p2), %s389_s8, 4294967040  ;;  %s397_s20 = sand.u32 1, %s3272_s6   ;;  %s401_s28 = scalar_lea.vmem [#allocation7], %s3513_s22 }
  0xb6   : > { %s398_s4 = scalar_lea.sflag [#allocation8], %s397_s20 }
  0xb7   : > { %3149 = dma.done.wait (%p4039_p2), %s398_s4, 512  }
  0xb8   : > { %3151 = vsyncadd (%p4039_p2), %s398_s4, 4294966784  ;;  %s410_s13 = scalar_lea.vmem [#allocation9], %s3513_s22  ;;  %s416_s0 = scalar_lea.sflag [#allocation11], %s397_s20 }
  0xb9   : > { %s419_s12 = scalar_lea.vmem [#allocation10], %s3513_s22 }
  0xba   : > { %3153 = dma.done.wait (%p4039_p2), %s416_s0, 256  }
  0xbb   : > { %3155 = vsyncadd (%p4039_p2), %s416_s0, 4294967040  ;;  %p4040_p4 = scmp.eq.s32.totalorder %s3272_s6, 0 }
  0xbd   : > { %3157 = dma.done.wait (%p4040_p4), [#allocation11], 256   ;;  %p4041_p7 = pmov %p4040_p4 }
  0xbe   : > { %p4042_p3 = pmov %p4040_p4 }
  0xbf   : > { %3159 = vsyncadd (%p4041_p7), [#allocation11], 4294967040 }
  0xc0   : > { %3161 = dma.done.wait (%p4042_p3), [#allocation6], 16   ;;  %p4043_p8 = pmov %p4042_p3 }
  0xc2   : > { %3163 = vsyncadd (%p4043_p8), [#allocation6], 4294967280 }
  0xc3   : > { %432 = sfence }
  0xc4   : > { %v488_v0 = vld [vmem:[%s419_s12 + $0x8] sm:$0xff]  ;;  %v487_v1 = vld [vmem:[%s419_s12] sm:$0xff]  ;;  %vm1017_vm4 = vcmask 130048   ;;  %s3196_s17 = smov 1   ;;  %s3197_s11 = smov 127  }
  0xc5   : > { %v485_v2 = vld [vmem:[%s410_s13] sm:$0xff]  ;;  %v518_v3 = vand.u32 4294901760, %v488_v0  ;;  %v521_v4 = vand.u32 4294901760, %v487_v1  ;;  %v486_v6 = vld [vmem:[%s410_s13 + $0x8] sm:$0xff]  ;;  %s2066_s5 = sld [smem:[#allocation13]]  ;;  %p4044_p10 = scmp.ne.s32.totalorder %s4021_s18, 0 }
  0xc6   : > { %v556_v5 = vand.u32 4294901760, %v485_v2  ;;  %v566_v7 = vand.u32 4294901760, %v486_v6  ;;  %v1016_v24 = vld [vmem:[#allocation12 + $0x8] sm:$0xff]  ;;  %v1015_v30 = vld [vmem:[#allocation12] sm:$0xff]  ;;  %s2582_s15 = sld [smem:[#allocation13 + $0x1]] }
  0xc7   : > { %2687 = vmatprep.subr.mxu0 %v518_v3  ;;  %v606_v8 = vsub.f32 %v488_v0, %v518_v3  ;;  %v613_v10 = vsub.f32 %v487_v1, %v521_v4  ;;  %v3541_v25 = vand.u32 4294901760, %v1016_v24  ;;  %v3557_v31 = vand.u32 4294901760, %v1015_v30  ;;  %s2585_s23 = sld [smem:[#allocation13 + $0x4]] }
  0xc8   : > { %v557_v9 = vsub.f32 %v485_v2, %v556_v5  ;;  %2698 = vmatprep.mubr.f32.mxu1 %v556_v5  ;;  %2688 = vmatpush3.xpose.msra.mxu0 %v518_v3  ;;  %v567_v11 = vsub.f32 %v486_v6, %v566_v7  ;;  %s2588_s26 = sld [smem:[#allocation13 + $0x7]] }
  0xc9   : > { %2689 = vmatprep.subr.mxu0 %v521_v4  ;;  %v607_v12 = vand.u32 4294901760, %v606_v8  ;;  %v614_v14 = vand.u32 4294901760, %v613_v10  ;;  %v3544_v26 = vsub.f32 %v1016_v24, %v3541_v25  ;;  %v3560_v32 = vsub.f32 %v1015_v30, %v3557_v31  ;;  %v3598_v24 = vld [vmem:[%s392_s21] sm:$0xff]  ;;  %s2584_s29 = sld [smem:[#allocation13 + $0x3]] }
  0xca   : > { %v558_v13 = vand.u32 4294901760, %v557_v9  ;;  %v568_v15 = vand.u32 4294901760, %v567_v11  ;;  %2100 = vrot.lane.b32.xlu1 %v3598_v24, %s3196_s17  ;;  %v3622_v30 = vld [vmem:[%s401_s28] sm:$0xff]  ;;  %s2587_s14 = sld [smem:[#allocation13 + $0x6]] }
  0xcb   : > { %v608_v16 = vsub.f32 %v606_v8, %v607_v12  ;;  %v615_v18 = vsub.f32 %v613_v10, %v614_v14  ;;  %v3549_v27 = vand.u32 4294901760, %v3544_v26  ;;  %v3565_v33 = vand.u32 4294901760, %v3560_v32  ;;  %s2583_s24 = sld [smem:[#allocation13 + $0x2]] }
  0xcc   : > { %v559_v17 = vsub.f32 %v557_v9, %v558_v13  ;;  %2690 = vmatpush3.xpose.msra.mxu0 %v521_v4  ;;  %v569_v19 = vsub.f32 %v567_v11, %v568_v15  ;;  %s2586_s1 = sld [smem:[#allocation13 + $0x5]] }
  0xcd   : > { %v609_v20 = vand.u32 4294901760, %v608_v16  ;;  %2701 = vmatprep.subr.mxu0 %v606_v8  ;;  %v616_v22 = vand.u32 4294901760, %v615_v18  ;;  %v1143_v28 = vsub.f32 %v3544_v26, %v3549_v27  ;;  %v1150_v34 = vsub.f32 %v3560_v32, %v3565_v33  ;;  %s2589_s25 = sld [smem:[#allocation13 + $0x8]] }
  0xce   : > { %v560_v21 = vand.u32 4294901760, %v559_v17  ;;  %v570_v23 = vand.u32 4294901760, %v569_v19  ;;  %s3707_s16 = sld [smem:[#allocation13 + $0xa]] }
  0xcf   : > { %2694 = vmatprep.subr.mxu1 %v609_v20  ;;  %v3553_v29 = vand.u32 4294901760, %v1143_v28  ;;  %v3570_v35 = vand.u32 4294901760, %v1150_v34  ;;  %v3606_v28 = vld [vmem:[%s392_s21 + $0x8] sm:$0xff]  ;;  %s3709_s19 = sld [smem:[#allocation13 + $0xd]] }
  0xd0   : > { %2691 = vmatprep.mubr.f32.mxu0 %v560_v21  ;;  %2695 = vmatpush3.xpose.msra.mxu1 %v609_v20  ;;  %s2590_s8 = sld [smem:[#allocation13 + $0x9]] }
  0xd1   : > { %2692 = vmatmul.mubr.f32.vlgmr.msra.gmra.mxu0 %v570_v23  ;;  %2696 = vmatprep.subr.mxu1 %v616_v22  ;;  %s3715_s21 = sld [smem:[#allocation13 + $0xf]] }
  0xd2   : > { %2702 = vmatpush3.xpose.msra.mxu0 %v606_v8  ;;  %2705 = vmatprep.mubr.f32.mxu0 %v557_v9  ;;  %s3725_s20 = sld [smem:[#allocation13 + $0x10]] }
  0xd3   : > { %2703 = vmatprep.subr.mxu0 %v613_v10  ;;  %2102 = vrot.lane.b32.xlu1 %v3606_v28, %s3196_s17  ;;  %s2593_s4 = sld [smem:[#allocation13 + $0xc]] }
  0xd4   : > { %2697 = vmatpush3.xpose.msra.mxu1 %v616_v22  ;;  %s3743_s13 = sld [smem:[#allocation13 + $0xe]] }
  0xd5   : > { %2708 = vmatprep.subr.mxu1 %v518_v3  ;;  %s3745_s0 = sld [smem:[#allocation13 + $0x11]] }
  0xd6   : > { %2704 = vmatpush3.xpose.msra.mxu0 %v613_v10  ;;  %s2084_s12 = sld [smem:[#allocation2]] }
  0xd7   : > { %2715 = vmatprep.subr.mxu0 %v607_v12  ;;  %2699 = vmatmul.mubr.f32.vlgmr.msra.gmra.mxu1 %v566_v7 }
  0xd8   : > { %2709 = vmatpush3.xpose.msra.mxu1 %v518_v3  ;;  %2712 = vmatprep.mubr.f32.mxu1 %v558_v13 }
  0xd9   : > { %2706 = vmatmul.mubr.f32.vlgmr.msra.gmra.mxu0 %v567_v11  ;;  %2710 = vmatprep.subr.mxu1 %v521_v4 }
  0xda   : > { %2716 = vmatpush3.xpose.msra.mxu0 %v607_v12  ;;  %2719 = vmatprep.mubr.f32.mxu0 %v556_v5 }
  0xdb   : > { %2717 = vmatprep.subr.mxu0 %v614_v14 }
  0xdc   : > { %2711 = vmatpush3.xpose.msra.mxu1 %v521_v4 }
  0xdd   : > { %2722 = vmatprep.subr.mxu1 %v518_v3 }
  0xde   : > { %2718 = vmatpush3.xpose.msra.mxu0 %v614_v14 }
  0xdf   : > { %2713 = vmatmul.mubr.f32.vlgmr.msra.gmra.mxu1 %v568_v15  ;;  %2729 = vmatprep.subr.mxu0 %v3541_v25 }
  0xe0   : > { %2723 = vmatpush3.xpose.msra.mxu1 %v518_v3  ;;  %2726 = vmatprep.mubr.f32.mxu1 %v556_v5 }
  0xe1   : > { %2720 = vmatmul.mubr.f32.vlgmr.msra.gmra.mxu0 %v566_v7  ;;  %2724 = vmatprep.subr.mxu1 %v521_v4 }
  0xe2   : > { %2730 = vmatpush3.msra.mxu0 %v3541_v25 }
  0xe3   : > { %2731 = vmatprep.subr.mxu0 %v3557_v31 }
  0xe4   : > { %2725 = vmatpush3.xpose.msra.mxu1 %v521_v4  ;;  %2732 = vmatpush3.msra.mxu0 %v3557_v31 }
  0xe5   : > { %2736 = vmatprep.subr.mxu1 %v3553_v29  ;;  %2743 = vmatprep.subr.mxu0 %v3544_v26 }
  0xe7   : > { %2727 = vmatmul.mubr.f32.vlgmr.msra.gmra.mxu1 %v566_v7 }
  0xe8   : > { %2737 = vmatpush3.msra.mxu1 %v3553_v29 }
  0xe9   : > { %2738 = vmatprep.subr.mxu1 %v3570_v35 }
  0xea   : > { %2739 = vmatpush3.msra.mxu1 %v3570_v35 }
  0xeb   : > { %2750 = vmatprep.subr.mxu1 %v3541_v25 }
 0x191   : > { %v2693_v36 = vpop.f32.mrf.mxu0 }
 0x193   : > { %v562_v37 = vpop.f32.mrf.mxu0 }
 0x197   : > { %v2700_v38 = vpop.f32.mrf.mxu1 }
 0x198   : > { %v660_v41 = vadd.f32 %v2700_v38, %v2693_v36 }
 0x199   : > { %v653_v39 = vpop.f32.mrf.mxu1  ;;  %v2707_v40 = vpop.f32.mrf.mxu0 }
 0x19a   : > { %v654_v42 = vadd.f32 %v653_v39, %v562_v37  ;;  %v743_v45 = vadd.f32 %v2707_v40, %v660_v41 }
 0x19b   : > { %v735_v43 = vpop.f32.mrf.mxu0 }
 0x19c   : > { %v736_v48 = vadd.f32 %v735_v43, %v654_v42 }
 0x19f   : > { %v2714_v44 = vpop.f32.mrf.mxu1 }
 0x1a0   : > { %v826_v49 = vadd.f32 %v2714_v44, %v743_v45 }
 0x1a1   : > { %v817_v46 = vpop.f32.mrf.mxu1  ;;  %v2721_v47 = vpop.f32.mrf.mxu0 }
 0x1a2   : > { %v818_v50 = vadd.f32 %v817_v46, %v736_v48  ;;  %v909_v52 = vadd.f32 %v2721_v47, %v826_v49 }
 0x1a3   : > { %v902_v51 = vpop.f32.mrf.mxu0 }
 0x1a4   : > { %v903_v54 = vadd.f32 %v902_v51, %v818_v50  ;;  %v3658_v50 = vstv %s2066_s5  ;;  %v3660_v51 = vstv %s2584_s29  ;;  %s473_s5 = scalar_lea.vmem [#allocation14], %s3513_s22 }
 0x1a7   : > { %v2728_v53 = vpop.f32.mrf.mxu1 }
 0x1a8   : > { %v988_v55 = vadd.f32 %v2728_v53, %v909_v52  ;;  %v3662_v52 = vstv %s2587_s14 }
 0x1a9   : > { %v981_v56 = vpop.f32.mrf.mxu1 }
 0x1aa   : > { %v992_v57 = vmul.f32 -2.0, %v988_v55  ;;  %v982_v58 = vadd.f32 %v981_v56, %v903_v54 }
 0x1ac   : > { %v994_v59 = vmax.f32 %v992_v57, 0.0  ;;  %v991_v60 = vmul.f32 -2.0, %v982_v58 }
 0x1ae   : > { %2907 = vrsqrt.f32 %v994_v59  ;;  %v993_v61 = vmax.f32 %v991_v60, 0.0  ;;  %vm1004_vm0 = vcmp.eq.f32.partialorder %v994_v59, inf  ;;  %v1007_v1 = vand.u32 2147483648, %v994_v59 }
 0x1af   : > { %vm1006_vm1 = vcmp.eq.f32.partialorder %v994_v59, 0.0 }
 0x1b0   : > { %2909 = vrsqrt.f32 %v993_v61  ;;  %vm997_vm2 = vcmp.eq.f32.partialorder %v993_v61, inf  ;;  %v1000_v4 = vand.u32 2147483648, %v993_v61  ;;  %vm999_vm3 = vcmp.eq.f32.partialorder %v993_v61, 0.0 }
 0x1bb   : > { %v2908_v62 = vpop.eup %2907 }
 0x1bc   : > { %v1003_v63 = vmul.f32 %v2908_v62, %v994_v59  ;;  %v3671_v62 = vstv %s2583_s24  ;;  %s3199_s24 = smov [#allocation14]  }
 0x1bd   : > { %v2910_v0 = vpop.eup %2909 }
 0x1be   : > { %v996_v2 = vmul.f32 %v2910_v0, %v993_v61  ;;  %v1005_v3 = vsel %vm1004_vm0, %v994_v59, %v1003_v63  ;;  %v3673_v63 = vstv %s2586_s1  ;;  %v3675_v0 = vstv %s2589_s25  ;;  %s3080_s1 = sshll.u32 %s3199_s24, 4  ;;  %s3081_s1 = int_to_ptr.vmem [resolvable:$false] %s3080_s1 }
 0x1bf   : > { %v1008_v5 = vsel %vm1006_vm1, %v1007_v1, %v1005_v3  ;;  %s3082_s25 = scalar_lea.vmem %s3081_s1, 512 }
 0x1c0   : > { %v998_v6 = vsel %vm997_vm2, %v993_v61, %v996_v2  ;;  %v1010_v7 = vadd.f32 1.0, %v1008_v5 }
 0x1c1   : > { %v1001_v8 = vsel %vm999_vm3, %v1000_v4, %v998_v6 }
 0x1c2   : > { %v1009_v9 = vadd.f32 1.0, %v1001_v8  ;;  %2911 = vrcp.f32 %v1010_v7 }
 0x1c4   : > { %2913 = vrcp.f32 %v1009_v9 }
 0x1cf   : > { %v2912_v10 = vpop.eup %2911 }
 0x1d0   : > { %v1022_v11 = vsel %vm1017_vm4, %v2912_v10, 0 }
 0x1d1   : > { %v2914_v12 = vpop.eup %2913  ;;  %v1101_v13 = vand.u32 4294901760, %v1022_v11 }
 0x1d2   : > { %1526 = vxpose.xlu0.b32.start [1/2] (short) (narrow) %v2914_v12, 16  ;;  %v1019_v14 = vsel %vm1017_vm4, %v2914_v12, 0 }
 0x1d3   : > { %v1091_v15 = vand.u32 4294901760, %v1019_v14  ;;  %v1102_v16 = vsub.f32 %v1022_v11, %v1101_v13 }
 0x1d5   : > { %2740 = vmatprep.mubr.f32.mxu1 %v1091_v15  ;;  %v1092_v17 = vsub.f32 %v1019_v14, %v1091_v15  ;;  %v1103_v18 = vand.u32 4294901760, %v1102_v16 }
 0x1d6   : > { %1527 = vxpose.xlu0.b32.end [2/2] (short) (narrow) %v2912_v10, 16  ;;  %2741 = vmatmul.mubr.f32.vlgmr.msra.gmra.mxu1 %v1101_v13 }
 0x1d7   : > { %2751 = vmatpush3.msra.mxu1 %v3541_v25  ;;  %v1093_v19 = vand.u32 4294901760, %v1092_v17  ;;  %v1104_v20 = vsub.f32 %v1102_v16, %v1103_v18 }
 0x1d8   : > { %2752 = vmatprep.subr.mxu1 %v3557_v31 }
 0x1d9   : > { %2753 = vmatpush3.msra.mxu1 %v3557_v31  ;;  %2754 = vmatprep.mubr.f32.mxu1 %v1093_v19  ;;  %v1094_v21 = vsub.f32 %v1092_v17, %v1093_v19  ;;  %v1105_v23 = vand.u32 4294901760, %v1104_v20 }
 0x1da   : > { %2755 = vmatmul.mubr.f32.vlgmr.msra.gmra.mxu1 %v1103_v18  ;;  %2764 = vmatprep.subr.mxu1 %v3541_v25 }
 0x1db   : > { %2765 = vmatpush3.msra.mxu1 %v3541_v25  ;;  %2768 = vmatprep.mubr.f32.mxu1 %v1091_v15  ;;  %v1095_v22 = vand.u32 4294901760, %v1094_v21 }
 0x1dc   : > { %2766 = vmatprep.subr.mxu1 %v3557_v31 }
 0x1dd   : > { %2733 = vmatprep.mubr.f32.mxu0 %v1095_v22  ;;  %2767 = vmatpush3.msra.mxu1 %v3557_v31 }
 0x1de   : > { %2734 = vmatmul.mubr.f32.vlgmr.msra.gmra.mxu0 %v1105_v23  ;;  %2769 = vmatmul.mubr.f32.vlgmr.msra.gmra.mxu1 %v1101_v13 }
 0x1df   : > { %2744 = vmatpush3.msra.mxu0 %v3544_v26  ;;  %2747 = vmatprep.mubr.f32.mxu0 %v1092_v17 }
 0x1e0   : > { %2745 = vmatprep.subr.mxu0 %v3560_v32  ;;  %2778 = vmatprep.subr.mxu1 %v3553_v29 }
 0x1e1   : > { %2746 = vmatpush3.msra.mxu0 %v3560_v32  ;;  %2779 = vmatpush3.msra.mxu1 %v3553_v29  ;;  %v484_v29 = vld [vmem:[%s401_s28 + $0x8] sm:$0xff]  ;;  %s3739_s28 = sld [smem:[#allocation13 + $0xb]] }
 0x1e2   : > { %2748 = vmatmul.mubr.f32.vlgmr.msra.gmra.mxu0 %v1102_v16  ;;  %2757 = vmatprep.subr.mxu0 %v3549_v27 }
 0x1e3   : > { %2758 = vmatpush3.msra.mxu0 %v3549_v27  ;;  %2761 = vmatprep.mubr.f32.mxu0 %v1091_v15 }
 0x1e4   : > { %2759 = vmatprep.subr.mxu0 %v3565_v33  ;;  %2780 = vmatprep.subr.mxu1 %v3570_v35 }
 0x1e5   : > { %2760 = vmatpush3.msra.mxu0 %v3565_v33  ;;  %2781 = vmatpush3.msra.mxu1 %v3570_v35 }
 0x1e6   : > { %2762 = vmatmul.mubr.f32.vlgmr.msra.gmra.mxu0 %v1101_v13  ;;  %2792 = vmatprep.subr.mxu1 %v3541_v25 }
 0x1e7   : > { %2771 = vmatprep.subr.mxu0 %v3541_v25  ;;  %2227 = vrot.lane.b32.xlu1 %v484_v29, %s3196_s17 }
 0x1e8   : > { %2772 = vmatpush3.msra.mxu0 %v3541_v25 }
 0x1e9   : > { %2773 = vmatprep.subr.mxu0 %v3557_v31 }
 0x1ea   : > { %2774 = vmatpush3.msra.mxu0 %v3557_v31 }
 0x1eb   : > { %2785 = vmatprep.subr.mxu0 %v3544_v26  ;;  %2104 = vrot.lane.b32.xlu1 %v3598_v24, %s3197_s11 }
 0x1ef   : > { %2106 = vrot.lane.b32.xlu1 %v3606_v28, %s3197_s11 }
 0x1f3   : > { %2229 = vrot.lane.b32.xlu1 %v3622_v30, %s3197_s11 }
 0x1f7   : > { %2231 = vrot.lane.b32.xlu1 %v484_v29, %s3197_s11 }
 0x1ff   : > { %2225 = vrot.lane.b32.xlu0 %v3622_v30, %s3196_s17 }
 0x24e   : > { %v1542_v34 = vpop.trf.xlu0 }
 0x24f   : > { %v1559_v35 = vsel %vm1017_vm4, %v1542_v34, 0 }
 0x250   : > { %v1631_v36 = vand.u32 4294901760, %v1559_v35 }
 0x252   : > { %v1632_v37 = vsub.f32 %v1559_v35, %v1631_v36  ;;  %v1543_v38 = vpop.trf.xlu0  ;;  %2782 = vmatprep.mubr.f32.mxu1 %v1631_v36 }
 0x253   : > { %v1562_v39 = vsel %vm1017_vm4, %v1543_v38, 0 }
 0x254   : > { %v1641_v40 = vand.u32 4294901760, %v1562_v39  ;;  %v1633_v41 = vand.u32 4294901760, %v1632_v37 }
 0x256   : > { %v1642_v42 = vsub.f32 %v1562_v39, %v1641_v40  ;;  %2783 = vmatmul.mubr.f32.vlgmr.msra.gmra.mxu1 %v1641_v40  ;;  %v1634_v43 = vsub.f32 %v1632_v37, %v1633_v41 }
 0x257   : > { %2793 = vmatpush3.msra.mxu1 %v3541_v25  ;;  %2796 = vmatprep.mubr.f32.mxu1 %v1633_v41 }
 0x258   : > { %v1643_v44 = vand.u32 4294901760, %v1642_v42  ;;  %2794 = vmatprep.subr.mxu1 %v3557_v31  ;;  %v1635_v45 = vand.u32 4294901760, %v1634_v43 }
 0x259   : > { %2795 = vmatpush3.msra.mxu1 %v3557_v31 }
 0x25a   : > { %v1644_v46 = vsub.f32 %v1642_v42, %v1643_v44  ;;  %2775 = vmatprep.mubr.f32.mxu0 %v1635_v45  ;;  %2797 = vmatmul.mubr.f32.vlgmr.msra.gmra.mxu1 %v1643_v44 }
 0x25b   : > { %2806 = vmatprep.subr.mxu1 %v3541_v25  ;;  %2810 = vmatprep.mubr.f32.mxu1 %v1631_v36 }
 0x25c   : > { %v1645_v47 = vand.u32 4294901760, %v1644_v46  ;;  %2807 = vmatpush3.msra.mxu1 %v3541_v25  ;;  %v3645_v25 = vpop.permute.xlu1 %2100 }
 0x25d   : > { %2808 = vmatprep.subr.mxu1 %v3557_v31 }
 0x25e   : > { %2809 = vmatpush3.msra.mxu1 %v3557_v31  ;;  %2776 = vmatmul.mubr.f32.vlgmr.msra.gmra.mxu0 %v1645_v47  ;;  %v3649_v31 = vstv %s2582_s15  ;;  %s2348_s15 = sshll.u32 %s473_s5, 4  ;;  %s3853_s15 = int_to_ptr.vmem [resolvable:$true] %s2348_s15 }
 0x25f   : > { %2786 = vmatpush3.msra.mxu0 %v3544_v26  ;;  %2811 = vmatmul.mubr.f32.vlgmr.msra.gmra.mxu1 %v1641_v40  ;;  %v2244_v48 = vmul.f32 %v3649_v31, %v484_v29  ;;  %v2120_v43 = vmul.f32 %v3649_v31, %v3598_v24  ;;  %v2121_v44 = vmul.f32 %v3649_v31, %v3606_v28  ;;  %s3076_s14 = scalar_lea.vmem %s3853_s15, 256  ;;  %p3083_p12 = scmp.lt.s32.totalorder %s3853_s15, %s3081_s1 }
 0x260   : > { %2787 = vmatprep.subr.mxu0 %v3560_v32  ;;  %2789 = vmatprep.mubr.f32.mxu0 %v1632_v37  ;;  %v3647_v26 = vpop.permute.xlu1 %2102  ;;  %p3077_p9 = scmp.ne.s32.totalorder %s3853_s15, %s3076_s14  ;;  %p3084_p0 = scmp.lt.s32.totalorder %s3082_s25, %s3076_s14 }
 0x261   : > { %2788 = vmatpush3.msra.mxu0 %v3560_v32  ;;  %v3651_v32 = vstv %s2585_s23 }
 0x262   : > { %2799 = vmatprep.subr.mxu0 %v3549_v27  ;;  %2790 = vmatmul.mubr.f32.vlgmr.msra.gmra.mxu0 %v1642_v42  ;;  %v2148_v45 = vmul.f32 %v3651_v32, %v3598_v24  ;;  %p3078_p1 = pnand %p3077_p9, %p4044_p10  ;;  %p3085_p6 = por %p3084_p0, %p3083_p12 }
 0x263   : > { %2800 = vmatpush3.msra.mxu0 %v3549_v27  ;;  %2803 = vmatprep.mubr.f32.mxu0 %v1631_v36  ;;  %v3653_v27 = vstv %s2588_s26 }
 0x264   : > { %2801 = vmatprep.subr.mxu0 %v3565_v33  ;;  %v2288_v49 = vmul.f32 %v3653_v27, %v484_v29  ;;  %v2228_v53 = vpop.permute.xlu1 %2227  ;;  %v2176_v46 = vmul.f32 %v3653_v27, %v3598_v24  ;;  %v2177_v47 = vmul.f32 %v3653_v27, %v3606_v28  ;;  %v2174_v24 = vmul.f32 %v3662_v52, %v3647_v26  ;;  %p3079_p5 = pneg %p3078_p1 }
 0x265   : > { %2802 = vmatpush3.msra.mxu0 %v3565_v33  ;;  %v2266_v33 = vmul.f32 %v3651_v32, %v484_v29  ;;  %v2242_v54 = vmul.f32 %v2228_v53, %v3658_v50  ;;  %v2264_v55 = vmul.f32 %v2228_v53, %v3660_v51  ;;  %v2286_v56 = vmul.f32 %v2228_v53, %v3662_v52 }
 0x266   : > { %2804 = vmatmul.mubr.f32.vlgmr.msra.gmra.mxu0 %v1641_v40  ;;  %v2173_v53 = vmul.f32 %v3662_v52, %v3645_v25  ;;  %p3086_p13 = pnand %p3085_p6, %p3079_p5 }
 0x267   : > { %v2246_v57 = vadd.f32 %v2244_v48, %v2242_v54  ;;  %v2268_v58 = vadd.f32 %v2266_v33, %v2264_v55  ;;  %v2290_v59 = vadd.f32 %v2288_v49, %v2286_v56  ;;  %v2118_v48 = vmul.f32 %v3658_v50, %v3647_v26 }
 0x268   : > { %v3667_v60 = vpop.permute.xlu1 %2104  ;;  %v2117_v33 = vmul.f32 %v3658_v50, %v3645_v25  ;;  %v2145_v49 = vmul.f32 %v3660_v51, %v3645_v25  ;;  %v2149_v55 = vmul.f32 %v3651_v32, %v3606_v28  ;;  %v2146_v56 = vmul.f32 %v3660_v51, %v3647_v26 }
 0x269   : > { %v2125_v28 = vmul.f32 %v3671_v62, %v3667_v60  ;;  %v2153_v26 = vmul.f32 %v3673_v63, %v3667_v60 }
 0x26a   : > { %v2122_v25 = vadd.f32 %v2120_v43, %v2117_v33  ;;  %v3780_v43 = vstv %s3743_s13  ;;  %v3789_v33 = vstv %s3745_s0 }
 0x26c   : > { %v3669_v61 = vpop.permute.xlu1 %2106 }
 0x270   : > { %v2230_v1 = vpop.permute.xlu1 %2229 }
 0x271   : > { %v3678_v2 = vmul.f32 %v2230_v1, %v3671_v62  ;;  %v3681_v3 = vmul.f32 %v2230_v1, %v3673_v63  ;;  %v3684_v4 = vmul.f32 %v2230_v1, %v3675_v0  ;;  %v2178_v1 = vadd.f32 %v2176_v46, %v2173_v53 }
 0x274   : > { %v2232_v6 = vpop.permute.xlu1 %2231 }
 0x275   : > { %v2248_v7 = vmul.f32 %v2232_v6, %v3671_v62  ;;  %v2270_v8 = vmul.f32 %v2232_v6, %v3673_v63  ;;  %v2292_v9 = vmul.f32 %v2232_v6, %v3675_v0 }
 0x277   : > { %v3689_v11 = vadd.f32 %v2248_v7, %v2246_v57  ;;  %v3691_v12 = vadd.f32 %v2270_v8, %v2268_v58  ;;  %v3693_v13 = vadd.f32 %v2292_v9, %v2290_v59  ;;  %v2123_v57 = vadd.f32 %v2121_v44, %v2118_v48 }
 0x278   : > { %v2126_v58 = vmul.f32 %v3671_v62, %v3669_v61  ;;  %v2150_v59 = vadd.f32 %v2148_v45, %v2145_v49  ;;  %v2182_v7 = vmul.f32 %v3675_v0, %v3669_v61  ;;  %v3753_v8 = vstv %s2590_s8 }
 0x279   : > { %v2151_v9 = vadd.f32 %v2149_v55, %v2146_v56 }
 0x296   : > { %v2742_v5 = vpop.f32.mrf.mxu1 }
 0x298   : > { %v1188_v10 = vpop.f32.mrf.mxu1 }
 0x29a   : > { %v2756_v15 = vpop.f32.mrf.mxu1 }
 0x29c   : > { %v1352_v21 = vpop.f32.mrf.mxu1 }
 0x29e   : > { %v2735_v14 = vpop.f32.mrf.mxu0  ;;  %v2770_v36 = vpop.f32.mrf.mxu1 }
 0x29f   : > { %v1195_v17 = vadd.f32 %v2742_v5, %v2735_v14  ;;  %v2179_v5 = vadd.f32 %v2177_v47, %v2174_v24  ;;  %v2154_v14 = vmul.f32 %v3673_v63, %v3669_v61  ;;  %v2155_v61 = vadd.f32 %v2153_v26, %v2150_v59 }
 0x2a0   : > { %v1097_v16 = vpop.f32.mrf.mxu0  ;;  %v1516_v41 = vpop.f32.mrf.mxu1 }
 0x2a1   : > { %v1189_v19 = vadd.f32 %v1188_v10, %v1097_v16  ;;  %v2181_v10 = vmul.f32 %v3675_v0, %v3667_v60  ;;  %v2128_v16 = vadd.f32 %v2126_v58, %v2123_v57  ;;  %v3772_v60 = vstv %s3725_s20 }
 0x2a2   : > { %v2749_v18 = vpop.f32.mrf.mxu0  ;;  %v2127_v0 = vadd.f32 %v2125_v28, %v2122_v25  ;;  %v2184_v63 = vadd.f32 %v2182_v7, %v2179_v5 }
 0x2a3   : > { %v1278_v20 = vadd.f32 %v2749_v18, %v1195_v17  ;;  %v3763_v17 = vstv %s3707_s16 }
 0x2a4   : > { %v1270_v22 = vpop.f32.mrf.mxu0 }
 0x2a5   : > { %v1271_v23 = vadd.f32 %v1270_v22, %v1189_v19  ;;  %v1361_v29 = vadd.f32 %v2756_v15, %v1278_v20  ;;  %v3760_v15 = vstv %s3715_s21  ;;  %v3765_v19 = vstv %s2593_s4 }
 0x2a6   : > { %v2763_v34 = vpop.f32.mrf.mxu0  ;;  %v3769_v22 = vstv %s3709_s19 }
 0x2a7   : > { %v1444_v35 = vadd.f32 %v2763_v34, %v1361_v29  ;;  %v1353_v38 = vadd.f32 %v1352_v21, %v1271_v23  ;;  %v2183_v29 = vadd.f32 %v2181_v10, %v2178_v1  ;;  %v2156_v34 = vadd.f32 %v2154_v14, %v2151_v9 }
 0x2a8   : > { %v1437_v39 = vpop.f32.mrf.mxu0 }
 0x2a9   : > { %v3695_v37 = vadd.f32 %v2770_v36, %v1444_v35  ;;  %v1438_v40 = vadd.f32 %v1437_v39, %v1353_v38  ;;  %v3776_v36 = vstv %s3739_s28  ;;  %v2085_v38 = vlaneseq }
 0x2ab   : > { %2110 = vrot.lane.b32.xlu1 %v3695_v37, %s3196_s17  ;;  %v3701_v42 = vadd.f32 %v1516_v41, %v1438_v40  ;;  %v2136_v46 = vmul.f32 %v3763_v17, %v3695_v37  ;;  %v2164_v47 = vmul.f32 %v3769_v22, %v3695_v37  ;;  %v2192_v48 = vmul.f32 %v3772_v60, %v3695_v37 }
 0x2ac   : > { %v3791_v56 = vshrl.u32 %v2085_v38, 7 }
 0x2ad   : > { %v2135_v57 = vmul.f32 %v3763_v17, %v3701_v42  ;;  %v2163_v58 = vmul.f32 %v3769_v22, %v3701_v42  ;;  %v2191_v25 = vmul.f32 %v3772_v60, %v3701_v42 }
 0x2ae   : > { %vm2088_vm5 = vcmp.gt.s32.totalorder %v3791_v56, 0  ;;  %vm2202_vm7 = vcmp.lt.s32.totalorder %v3791_v56, 1  ;;  %vm2211_vm8 = vcmp.lt.s32.totalorder %v3791_v56, 7 }
 0x2af   : > { %2114 = vrot.lane.b32.xlu1 %v3695_v37, %s3197_s11 }
 0x2b3   : > { %2108 = vrot.lane.b32.xlu1 %v3701_v42, %s3196_s17 }
 0x2b7   : > { %2112 = vrot.lane.b32.xlu1 %v3701_v42, %s3197_s11 }
 0x316   : > { %v2784_v54 = vpop.f32.mrf.mxu1 }
 0x318   : > { %v1728_v6 = vpop.f32.mrf.mxu1 }
 0x31a   : > { %v2798_v18 = vpop.f32.mrf.mxu1 }
 0x31c   : > { %v1892_v45 = vpop.f32.mrf.mxu1 }
 0x31d   : > { %v2111_v62 = vpop.permute.xlu1 %2110 }
 0x31e   : > { %v2131_v20 = vmul.f32 %v3753_v8, %v2111_v62  ;;  %v2777_v21 = vpop.f32.mrf.mxu0  ;;  %v2187_v23 = vmul.f32 %v3760_v15, %v2111_v62  ;;  %v2159_v40 = vmul.f32 %v3765_v19, %v2111_v62 }
 0x31f   : > { %v1735_v41 = vadd.f32 %v2784_v54, %v2777_v21  ;;  %v2812_v26 = vpop.f32.mrf.mxu1 }
 0x320   : > { %v1637_v35 = vpop.f32.mrf.mxu0  ;;  %v2133_v39 = vadd.f32 %v2131_v20, %v2128_v16  ;;  %v2189_v53 = vadd.f32 %v2187_v23, %v2184_v63  ;;  %v2161_v59 = vadd.f32 %v2159_v40, %v2156_v34 }
 0x321   : > { %v2115_v44 = vpop.permute.xlu1 %2114  ;;  %v1729_v24 = vadd.f32 %v1728_v6, %v1637_v35 }
 0x322   : > { %v2791_v49 = vpop.f32.mrf.mxu0  ;;  %v2138_v37 = vadd.f32 %v2136_v46, %v2133_v39  ;;  %v2141_v6 = vmul.f32 %v3776_v36, %v2115_v44  ;;  %v2194_v16 = vadd.f32 %v2192_v48, %v2189_v53  ;;  %v2197_v62 = vmul.f32 %v3789_v33, %v2115_v44 }
 0x323   : > { %v1818_v55 = vadd.f32 %v2791_v49, %v1735_v41  ;;  %v2166_v35 = vadd.f32 %v2164_v47, %v2161_v59  ;;  %v2056_v41 = vpop.f32.mrf.mxu1  ;;  %v2169_v48 = vmul.f32 %v3780_v43, %v2115_v44 }
 0x324   : > { %v1810_v54 = vpop.f32.mrf.mxu0  ;;  %v2143_v46 = vadd.f32 %v2141_v6, %v2138_v37 }
 0x325   : > { %v1811_v1 = vadd.f32 %v1810_v54, %v1729_v24  ;;  %v2109_v5 = vpop.permute.xlu1 %2108  ;;  %v1901_v28 = vadd.f32 %v2798_v18, %v1818_v55  ;;  %v2087_v18 = vadd.s32 8, %v3791_v56  ;;  %v2171_v37 = vadd.f32 %v2169_v48, %v2166_v35 }
 0x326   : > { %v2130_v7 = vmul.f32 %v3753_v8, %v2109_v5  ;;  %v2158_v9 = vmul.f32 %v3765_v19, %v2109_v5  ;;  %v2186_v10 = vmul.f32 %v3760_v15, %v2109_v5  ;;  %v2805_v14 = vpop.f32.mrf.mxu0  ;;  %v2201_v54 = vrot.slane %v2143_v46, 7 }
 0x327   : > { %v1984_v20 = vadd.f32 %v2805_v14, %v1901_v28  ;;  %v1893_v42 = vadd.f32 %v1892_v45, %v1811_v1  ;;  %vm2095_vm6 = vcmp.lt.s32.totalorder %v2087_v18, 15 }
 0x328   : > { %v2132_v21 = vadd.f32 %v2130_v7, %v2127_v0  ;;  %v2160_v63 = vadd.f32 %v2158_v9, %v2155_v61  ;;  %v2188_v23 = vadd.f32 %v2186_v10, %v2183_v29  ;;  %v1977_v34 = vpop.f32.mrf.mxu0  ;;  %v2199_v0 = vadd.f32 %v2197_v62, %v2194_v16 }
 0x329   : > { %v3805_v38 = vadd.f32 %v2812_v26, %v1984_v20  ;;  %v1978_v39 = vadd.f32 %v1977_v34, %v1893_v42  ;;  %v2113_v40 = vpop.permute.xlu1 %2112  ;;  %v3838_v62 = vstv %s2084_s12 }
 0x32a   : > { %v2137_v49 = vadd.f32 %v2135_v57, %v2132_v21  ;;  %v2140_v45 = vmul.f32 %v3776_v36, %v2113_v40  ;;  %v2193_v29 = vadd.f32 %v2191_v25, %v2188_v23  ;;  %v2196_v47 = vmul.f32 %v3789_v33, %v2113_v40 }
 0x32b   : > { %v3810_v61 = vadd.f32 %v2056_v41, %v1978_v39  ;;  %2235 = vrot.lane.b32.xlu1 %v3805_v38, %s3196_s17  ;;  %v2165_v24 = vadd.f32 %v2163_v58, %v2160_v63  ;;  %v2168_v55 = vmul.f32 %v3780_v43, %v2113_v40  ;;  %v3198_v57 = vmov 0.0  }
 0x32c   : > { %v2142_v53 = vadd.f32 %v2140_v45, %v2137_v49  ;;  %v2198_v44 = vadd.f32 %v2196_v47, %v2193_v29  ;;  %v3821_v25 = vsel %vm2088_vm5, 1.0, %v3198_v57  ;;  %v2210_v58 = vrot.slane %v2199_v0, 1 }
 0x32d   : > { %2237 = vrot.lane.b32.xlu0 %v3810_v61, %s3197_s11  ;;  %v3826_v5 = vsel %vm2095_vm6, 1.0, %v3198_v57  ;;  %v2170_v28 = vadd.f32 %v2168_v55, %v2165_v24 }
 0x32e   : > { %v2200_v59 = vrot.slane %v2142_v53, 7  ;;  %v2209_v1 = vrot.slane %v2198_v44, 1 }
 0x32f   : > { %2233 = vrot.lane.b32.xlu1 %v3810_v61, %s3196_s17  ;;  %s2613_s17 = sshll.u32 %s3272_s6, 8 }
 0x330   : > { %v2203_v26 = vsel %vm2202_vm7, %v2200_v59, %v2201_v54  ;;  %v2204_v6 = vsel %vm2202_vm7, %v2201_v54, %v2200_v59  ;;  %v2212_v10 = vsel %vm2211_vm8, %v2209_v1, %v2210_v58  ;;  %v2213_v14 = vsel %vm2211_vm8, %v2210_v58, %v2209_v1  ;;  %s3851_s29 = scalar_lea.hbm %s3991_s7, %s2613_s17 }
 0x331   : > { %v2205_v7 = vmul.f32 %v3821_v25, %v2204_v6  ;;  %v2208_v9 = vadd.f32 %v2203_v26, %v2171_v37  ;;  %v2215_v16 = vmul.f32 %v3826_v5, %v2213_v14 }
 0x333   : > { %v2207_v20 = vadd.f32 %v2205_v7, %v2170_v28  ;;  %2239 = vrot.lane.b32.xlu1 %v3805_v38, %s3197_s11  ;;  %v2217_v42 = vadd.f32 %v2215_v16, %v2208_v9  ;;  %s2330_s11 = scalar_lea.sflag [#allocation5], %s3510_s27 }
 0x335   : > { %v2216_v21 = vadd.f32 %v2212_v10, %v2207_v20  ;;  %v2220_v63 = vadd.f32 %v3838_v62, %v2217_v42 }
 0x337   : > { %v2219_v23 = vadd.f32 %v3838_v62, %v2216_v21  ;;  %2915 = vtanh.f32 %v2220_v63 }
 0x339   : > { %2917 = vtanh.f32 %v2219_v23 }
 0x344   : > { %v2916_v34 = vpop.eup %2915 }
 0x345   : > { %2224 = vst [vmem:[%s473_s5 + $0x8] sm:$0xff] %v2916_v34 }
 0x346   : > { %v2918_v18 = vpop.eup %2917 }
 0x347   : > { %2223 = vst [vmem:[%s473_s5] sm:$0xff] %v2918_v18 }
 0x348   : > { %3089 = shalt.err (!%p3086_p13)
}
 0x349   : > { %s3090_s16 = scalar_lea.hbm %s3851_s29, 256  ;;  %s3094_s21 = scalar_lea.hbm %s3991_s7, 512 }
 0x34a   : > { %p3091_p11 = scmp.ne.s32.totalorder %s3851_s29, %s3090_s16  ;;  %p3095_p7 = scmp.lt.s32.totalorder %s3851_s29, %s3991_s7 }
 0x34b   : > { %p3096_p3 = scmp.lt.s32.totalorder %s3094_s21, %s3090_s16 }
 0x34c   : > { %p3092_p2 = pnand %p3091_p11, %p4044_p10 }
 0x34d   : > { %p3097_p8 = por %p3096_p3, %p3095_p7 }
 0x34e   : > { %p3093_p4 = pneg %p3092_p2 }
 0x350   : > { %p3098_p9 = pnand %p3097_p8, %p3093_p4 }
 0x352   : > { %3101 = shalt.err (!%p3098_p9)
}
 0x353   : > { %s3200_s28 = smov 128   ;;  %s3201_s13 = smov 8   ;;  %v2226_v35 = vpop.permute.xlu0 %2225  ;;  %v2243_v40 = vmul.f32 %v3649_v31, %v3622_v30  ;;  %v2265_v46 = vmul.f32 %v3651_v32, %v3622_v30  ;;  %v2287_v49 = vmul.f32 %v3653_v27, %v3622_v30  ;;  %v2256_v30 = vmul.f32 %v3763_v17, %v3805_v38 }
 0x354   : > { %2829 = dma.vmem_to_hbm [thread:$0]  (%p4044_p10), %s3853_s15, 256, %s3851_s29, %s2330_s11, %s3200_s28, %s3200_s28, %s3201_s13   ;;  %v2241_v39 = vmul.f32 %v2226_v35, %v3658_v50  ;;  %v2263_v41 = vmul.f32 %v2226_v35, %v3660_v51  ;;  %v2285_v48 = vmul.f32 %v2226_v35, %v3662_v52  ;;  %v2278_v54 = vmul.f32 %v3769_v22, %v3805_v38 }
 0x355   : > { %v2299_v1 = vmul.f32 %v3772_v60, %v3810_v61  ;;  %s480_s0 = scalar_lea.vmem [#allocation15], %s3513_s22  ;;  %s4045_s23 = sld [smem:[#allocation32_spill]] }
 0x356   : > { %v2245_v45 = vadd.f32 %v2243_v40, %v2241_v39  ;;  %v2267_v0 = vadd.f32 %v2265_v46, %v2263_v41  ;;  %v2289_v29 = vadd.f32 %v2287_v49, %v2285_v48  ;;  %s2364_s12 = sshll.u32 %s480_s0, 4  ;;  %s2335_s29 = scalar_lea.sflag [#allocation16], %s3510_s27  ;;  %s3940_s12 = int_to_ptr.vmem [resolvable:$true] %s2364_s12 }
 0x357   : > { %s3102_s11 = scalar_lea.vmem %s3940_s12, 256  ;;  %s3202_s6 = smov [#allocation15]  }
 0x358   : > { %v2249_v51 = vadd.f32 %v3678_v2, %v2245_v45  ;;  %v2271_v27 = vadd.f32 %v3681_v3, %v2267_v0  ;;  %v2293_v55 = vadd.f32 %v3684_v4, %v2289_v29  ;;  %v2300_v2 = vmul.f32 %v3772_v60, %v3805_v38  ;;  %p3103_p1 = scmp.ne.s32.totalorder %s3940_s12, %s3102_s11  ;;  %s3106_s22 = sshll.u32 %s3202_s6, 4  ;;  %s3107_s22 = int_to_ptr.vmem [resolvable:$false] %s3106_s22 }
 0x359   : > { %v2255_v3 = vmul.f32 %v3763_v17, %v3810_v61  ;;  %v2277_v4 = vmul.f32 %v3769_v22, %v3810_v61  ;;  %s3108_s14 = scalar_lea.vmem %s3107_s22, 512  ;;  %p3109_p0 = scmp.lt.s32.totalorder %s3940_s12, %s3107_s22 }
 0x35a   : > { %p3104_p5 = pnand %p3103_p1, %p4044_p10  ;;  %p3110_p6 = scmp.lt.s32.totalorder %s3108_s14, %s3102_s11 }
 0x35b   : > { %s3938_s26 = scalar_lea.hbm %s4045_s23, %s2613_s17 }
 0x35c   : > { %p3105_p12 = pneg %p3104_p5  ;;  %p3111_p13 = por %p3110_p6, %p3109_p0 }
 0x35e   : > { %p3112_p11 = pnand %p3111_p13, %p3105_p12 }
 0x39d   : > { %v2236_v47 = vpop.permute.xlu1 %2235 }
 0x39e   : > { %v2252_v53 = vmul.f32 %v2236_v47, %v3753_v8  ;;  %v2274_v50 = vmul.f32 %v2236_v47, %v3765_v19  ;;  %v2296_v31 = vmul.f32 %v2236_v47, %v3760_v15 }
 0x39f   : > { %v2238_v57 = vpop.permute.xlu0 %2237 }
 0x3a0   : > { %v2254_v24 = vadd.f32 %v2252_v53, %v3689_v11  ;;  %v2276_v32 = vadd.f32 %v2274_v50, %v3691_v12  ;;  %v2298_v52 = vadd.f32 %v2296_v31, %v3693_v13  ;;  %v2281_v20 = vmul.f32 %v2238_v57, %v3780_v43 }
 0x3a1   : > { %v2234_v44 = vpop.permute.xlu1 %2233 }
 0x3a2   : > { %v2251_v11 = vmul.f32 %v2234_v44, %v3753_v8  ;;  %v2273_v12 = vmul.f32 %v2234_v44, %v3765_v19  ;;  %v2295_v13 = vmul.f32 %v2234_v44, %v3760_v15  ;;  %v2258_v59 = vadd.f32 %v2256_v30, %v2254_v24 }
 0x3a3   : > { %v2280_v37 = vadd.f32 %v2278_v54, %v2276_v32  ;;  %v2302_v58 = vadd.f32 %v2300_v2, %v2298_v52  ;;  %v2259_v8 = vmul.f32 %v2238_v57, %v3776_v36  ;;  %v2303_v19 = vmul.f32 %v2238_v57, %v3789_v33 }
 0x3a4   : > { %v2253_v38 = vadd.f32 %v2251_v11, %v2249_v51  ;;  %v2275_v28 = vadd.f32 %v2273_v12, %v2271_v27  ;;  %v2297_v26 = vadd.f32 %v2295_v13, %v2293_v55 }
 0x3a5   : > { %v2240_v15 = vpop.permute.xlu1 %2239 }
 0x3a6   : > { %v2257_v6 = vadd.f32 %v2255_v3, %v2253_v38  ;;  %v2279_v7 = vadd.f32 %v2277_v4, %v2275_v28  ;;  %v2301_v9 = vadd.f32 %v2299_v1, %v2297_v26  ;;  %v2260_v17 = vmul.f32 %v2240_v15, %v3776_v36 }
 0x3a7   : > { %v2282_v22 = vmul.f32 %v2240_v15, %v3780_v43  ;;  %v2304_v10 = vmul.f32 %v2240_v15, %v3789_v33 }
 0x3a8   : > { %v2261_v14 = vadd.f32 %v2259_v8, %v2257_v6  ;;  %v2305_v16 = vadd.f32 %v2303_v19, %v2301_v9  ;;  %v2262_v60 = vadd.f32 %v2260_v17, %v2258_v59  ;;  %v2283_v18 = vadd.f32 %v2281_v20, %v2279_v7 }
 0x3a9   : > { %v2306_v61 = vadd.f32 %v2304_v10, %v2302_v58  ;;  %v2284_v23 = vadd.f32 %v2282_v22, %v2280_v37 }
 0x3aa   : > { %v2307_v42 = vrot.slane %v2261_v14, 7  ;;  %v2315_v21 = vrot.slane %v2305_v16, 1  ;;  %v2308_v63 = vrot.slane %v2262_v60, 7 }
 0x3ab   : > { %v2316_v34 = vrot.slane %v2306_v61, 1 }
 0x3ac   : > { %v2309_v36 = vsel %vm2202_vm7, %v2307_v42, %v2308_v63  ;;  %v2310_v35 = vsel %vm2202_vm7, %v2308_v63, %v2307_v42 }
 0x3ad   : > { %v2311_v33 = vmul.f32 %v3821_v25, %v2310_v35  ;;  %v2314_v39 = vadd.f32 %v2309_v36, %v2284_v23  ;;  %v2317_v43 = vsel %vm2211_vm8, %v2315_v21, %v2316_v34  ;;  %v2318_v40 = vsel %vm2211_vm8, %v2316_v34, %v2315_v21 }
 0x3ae   : > { %v2320_v41 = vmul.f32 %v3826_v5, %v2318_v40 }
 0x3af   : > { %v2313_v46 = vadd.f32 %v2311_v33, %v2283_v18 }
 0x3b0   : > { %v2322_v48 = vadd.f32 %v2320_v41, %v2314_v39 }
 0x3b1   : > { %v2321_v49 = vadd.f32 %v2317_v43, %v2313_v46 }
 0x3b2   : > { %v2324_v45 = vadd.f32 %v2322_v48, %v3838_v62 }
 0x3b3   : > { %v2323_v0 = vadd.f32 %v2321_v49, %v3838_v62 }
 0x3b4   : > { %2919 = vtanh.f32 %v2324_v45 }
 0x3b5   : > { %2921 = vtanh.f32 %v2323_v0 }
 0x3c1   : > { %v2920_v25 = vpop.eup %2919 }
 0x3c2   : > { %v2922_v56 = vpop.eup %2921  ;;  %2328 = vst [vmem:[%s480_s0 + $0x8] sm:$0xff] %v2920_v25 }
 0x3c3   : > { %2327 = vst [vmem:[%s480_s0] sm:$0xff] %v2922_v56 }
 0x3c4   : > { %3115 = shalt.err (!%p3112_p11)
}
 0x3c5   : > { %s3116_s17 = scalar_lea.hbm %s3938_s26, 256  ;;  %s3120_s1 = scalar_lea.hbm %s4045_s23, 512 }
 0x3c6   : > { %p3117_p2 = scmp.ne.s32.totalorder %s3938_s26, %s3116_s17  ;;  %p3121_p3 = scmp.lt.s32.totalorder %s3938_s26, %s4045_s23 }
 0x3c7   : > { %p3122_p8 = scmp.lt.s32.totalorder %s3120_s1, %s3116_s17 }
 0x3c8   : > { %p3118_p4 = pnand %p3117_p2, %p4044_p10 }
 0x3c9   : > { %p3123_p9 = por %p3122_p8, %p3121_p3 }
 0x3ca   : > { %p3119_p7 = pneg %p3118_p4 }
 0x3cc   : > { %p3124_p1 = pnand %p3123_p9, %p3119_p7 }
 0x3ce   : > { %3127 = shalt.err (!%p3124_p1)
}
 0x3cf   : > { %2830 = dma.vmem_to_hbm [thread:$0]  (%p4044_p10), %s3940_s12, 256, %s3938_s26, %s2335_s29, %s3200_s28, %s3200_s28, %s3201_s13  }
 0x3d0 PF: > { %s4046_s19 = sld [smem:[#allocation24_spill]]  ;;  %p4049_p12 = scmp.ge.s32.totalorder %s3186_s10, 2 }
 0x3d1   : > { %s4047_s8 = sld [smem:[#allocation27_spill]] }
 0x3d6   : > { %s2379_s21 = sand.u32 1, %s4046_s19  }
 0x3d7   : > { %p4048_p5 = scmp.ne.s32.totalorder %s4047_s8, 0  ;;  %s2380_s20 = scalar_lea.sflag [#allocation5], %s2379_s21 }
 0x3d9   : > { %p2854_p0 = pnand %p4049_p12, %p4048_p5 }
 0x3db   : > { %p2855_p6 = pneg %p2854_p0 }
 0x3dd   : > { %3165 = dma.done.wait (%p2855_p6), %s2380_s20, 256  }
 0x3de   : > { %3167 = vsyncadd (%p2855_p6), %s2380_s20, 4294967040  ;;  %s2389_s4 = scalar_lea.sflag [#allocation16], %s2379_s21 }
 0x3df   : > { %3169 = dma.done.wait (%p2855_p6), %s2389_s4, 256  }
 0x3e0   : > { %3171 = vsyncadd (%p2855_p6), %s2389_s4, 4294967040  ;;  %s4050_s10 = sld [smem:[#allocation25_spill]]  ;;  %s4052_s29 = smov %s3178_s30 }
 0x3e1   : > { %s4051_s18 = sld [smem:[#allocation26_spill]]  ;;  %s4053_s30 = smov %s3182_s9 }
 0x3e6   : > { %p33_p10 = scmp.ge.s32.totalorder %s4050_s10, 4  }
 0x3e7   : > { %s4054_s9 = smov %s4051_s18 }
 0x3e8   :  { %35 = sbr.rel (!%p33_p10) target bundleno = 19 (0x13), region = 156 }
 0x3ed   :  { %2394 = vsyncpa [#allocation4], 1 }
 0x3ee   :  { %2396 = vsyncpa [#allocation4 + $0x1], 1 }
 0x3ef   :  { %2397 = vsyncpa [#allocation8], 1 }
 0x3f0   :  { %2399 = vsyncpa [#allocation8 + $0x1], 1 }
 0x3f1   :  { %2400 = vsyncpa [#allocation11], 1 }
 0x3f2   :  { %2402 = vsyncpa [#allocation11 + $0x1], 1 }
 0x3f3   :  { %2403 = vsyncpa [#allocation5], 1 }
 0x3f4   :  { %2405 = vsyncpa [#allocation5 + $0x1], 1 }
 0x3f5   :  { %2406 = vsyncpa [#allocation16], 1 }
 0x3f6   :  { %2408 = vsyncpa [#allocation16 + $0x1], 1 }
 0x3f7   :  { %2409 = vsyncpa [#allocation6], 1 }
 0x3f8   :  { %2411 = vsyncpa [#allocation6 + $0x1], 1 }

</bundles_post_ra>
